<compile_context>
chip_gen: v6e
topology: v6e:2x2x1
jax: 0.10.0
libtpu: 0.0.40
codegen_flags: <defaults>
</compile_context>

<pallas_src>
import functools

import jax
import jax.numpy as jnp
from jax.experimental import pallas as pl
from jax.experimental.pallas import tpu as pltpu

LANE = 128       # channel padding (lane width)
ROW_TILE = 128   # node-row padding


# ----------------------------- Pallas kernel -------------------------------

def _fused_kernel(x_ref, adj_ref, w1_ref, b1_ref,
                  wa1_ref, bc1_ref, wa2_ref, bc2_ref,
                  w2_ref, b2_ref, o_ref, *,
                  num_rel1, n_pad, c_pad, slope):

    def lrelu(v):
        return jnp.where(v >= 0, v, slope * v)

    # ---- linear_in + LeakyReLU (bf16 operands, f32 accumulate) ----
    h = jnp.dot(x_ref[...], w1_ref[...],
                preferred_element_type=jnp.float32) + b1_ref[...]
    h = lrelu(h)

    # ---- one graph conv = per-relation accumulation over lane-aligned slices ----
    def conv(h, wa_ref, b_ref):
        hb = h.astype(jnp.bfloat16)
        acc = None
        for r in range(num_rel1):
            # transform for relation r: h @ W_r            (K = c_pad = 128)
            t_r = jnp.dot(hb, wa_ref[:, r * c_pad:(r + 1) * c_pad],
                          preferred_element_type=jnp.float32)
            # aggregate for relation r: A_r @ t_r          (K = n_pad = 128)
            part = jnp.dot(adj_ref[:, r * n_pad:(r + 1) * n_pad],
                           t_r.astype(jnp.bfloat16),
                           preferred_element_type=jnp.float32)
            acc = part if acc is None else acc + part
        return acc + b_ref[...]

    h = conv(h, wa1_ref, bc1_ref)
    # F.dropout(..., training=False) -> identity
    h = conv(h, wa2_ref, bc2_ref)

    # ---- linear_out + LeakyReLU ----
    y = jnp.dot(h.astype(jnp.bfloat16), w2_ref[...],
                preferred_element_type=jnp.float32) + b2_ref[...]
    o_ref[...] = lrelu(y)


# ------------------------------ plain-JAX glue ------------------------------

def _pad_to(a, shape):
    out = jnp.zeros(shape, a.dtype)
    return out.at[tuple(slice(0, s) for s in a.shape)].set(a)


def build_norm_adj(edge_index, edge_type, num_nodes, num_relations):
    """Dense per-relation adjacency with mean normalization over incoming edges."""
    src, dst = edge_index[0], edge_index[1]
    adj = jnp.zeros((num_relations, num_nodes, num_nodes), jnp.float32)
    adj = adj.at[edge_type, dst, src].add(1.0)
    deg = adj.sum(axis=-1, keepdims=True)
    return adj / jnp.maximum(deg, 1.0)


def pack_adj(adj, num_nodes, num_rel, n_pad):
    """[i, r*n_pad + j] = A_r[i, j] for r < R, identity block for the root weight."""
    r1 = num_rel + 1
    adj_p = jnp.zeros((r1, n_pad, n_pad), jnp.float32)
    adj_p = adj_p.at[:num_rel, :num_nodes, :num_nodes].set(adj)
    adj_p = adj_p.at[num_rel].set(jnp.eye(n_pad, dtype=jnp.float32))   # root/self block
    return adj_p.transpose(1, 0, 2).reshape(n_pad, r1 * n_pad).astype(jnp.bfloat16)


def pack_params(params, num_rel, hid):
    r1 = num_rel + 1

    def bf16(a):
        return a.astype(jnp.bfloat16)

    def stack_conv_weights(w_rel, w_root):
        w_all = jnp.zeros((LANE, r1 * LANE), jnp.float32)
        for r in range(num_rel):
            w_all = w_all.at[:hid, r * LANE:r * LANE + hid].set(w_rel[r])
        w_all = w_all.at[:hid, num_rel * LANE:num_rel * LANE + hid].set(w_root)
        return bf16(w_all)

    return {
        "w1": bf16(_pad_to(params["w1"], (LANE, LANE))),
        "b1": _pad_to(params["b1"], (1, LANE)),
        "wa1": stack_conv_weights(params["c1_wrel"], params["c1_wroot"]),
        "bc1": _pad_to(params["c1_b"], (1, LANE)),
        "wa2": stack_conv_weights(params["c2_wrel"], params["c2_wroot"]),
        "bc2": _pad_to(params["c2_b"], (1, LANE)),
        "w2": bf16(_pad_to(params["w2"], (LANE, LANE))),
        "b2": _pad_to(params["b2"], (1, LANE)),
    }


@functools.partial(jax.jit,
                   static_argnames=("num_nodes", "out_channels", "num_rel1", "n_pad"))
def rgcn_forward_packed(x_p, adj_cat, packed, *,
                        num_nodes, out_channels, num_rel1, n_pad):
    """Jitted wrapper around the fused Pallas kernel (inputs already packed/padded)."""
    inputs = (x_p, adj_cat,
              packed["w1"], packed["b1"],
              packed["wa1"], packed["bc1"],
              packed["wa2"], packed["bc2"],
              packed["w2"], packed["b2"])

    # advisory cost estimate (padded shapes)
    flops = 2 * 2 * n_pad * LANE * LANE                                      # two linears
    flops += 2 * 2 * (n_pad * LANE * num_rel1 * LANE                         # transforms
                      + n_pad * (num_rel1 * n_pad) * LANE)                   # aggregates
    bytes_accessed = sum(int(a.size) * a.dtype.itemsize for a in inputs) + n_pad * LANE * 4

    out_p = pl.pallas_call(
        functools.partial(_fused_kernel, num_rel1=num_rel1, n_pad=n_pad,
                          c_pad=LANE, slope=0.01),
        out_shape=jax.ShapeDtypeStruct((n_pad, LANE), jnp.float32),
        in_specs=[pl.BlockSpec(memory_space=pltpu.MemorySpace.VMEM)] * len(inputs),
        out_specs=pl.BlockSpec(memory_space=pltpu.MemorySpace.VMEM),
        compiler_params=pltpu.CompilerParams(vmem_limit_bytes=4 * 1024 * 1024),
        cost_estimate=pl.CostEstimate(flops=int(flops), transcendentals=0,
                                      bytes_accessed=int(bytes_accessed)),
    )(*inputs)
    return out_p[:num_nodes, :out_channels]


def init_params(key, in_c, hid, out_c, num_rel):
    ks = jax.random.split(key, 12)
    s = 0.1
    return {
        # nn.Linear weights stored pre-transposed as [in, out]
        "w1": jax.random.normal(ks[0], (in_c, hid), jnp.float32) * s,
        "b1": jax.random.normal(ks[1], (1, hid), jnp.float32) * s,
        "w2": jax.random.normal(ks[2], (hid, out_c), jnp.float32) * s,
        "b2": jax.random.normal(ks[3], (1, out_c), jnp.float32) * s,
        # conv 1
        "c1_wrel": jax.random.normal(ks[4], (num_rel, hid, hid), jnp.float32) * s,
        "c1_wroot": jax.random.normal(ks[5], (hid, hid), jnp.float32) * s,
        "c1_b": jax.random.normal(ks[6], (1, hid), jnp.float32) * s,
        # conv 2
        "c2_wrel": jax.random.normal(ks[7], (num_rel, hid, hid), jnp.float32) * s,
        "c2_wroot": jax.random.normal(ks[8], (hid, hid), jnp.float32) * s,
        "c2_b": jax.random.normal(ks[9], (1, hid), jnp.float32) * s,
    }


# pure-JAX f32 reference for correctness check
def rgcn_forward_ref(params, x, adj):
    def lrelu(v):
        return jnp.where(v >= 0, v, 0.01 * v)

    def conv(h, wrel, wroot, b):
        out = h @ wroot + b
        out = out + jnp.einsum("rij,jh,rho->io", adj, h, wrel)
        return out

    h = lrelu(x @ params["w1"] + params["b1"])
    h = conv(h, params["c1_wrel"], params["c1_wroot"], params["c1_b"])
    h = conv(h, params["c2_wrel"], params["c2_wroot"], params["c2_b"])
    return lrelu(h @ params["w2"] + params["b2"])


# ----------------------------------- main -----------------------------------

if __name__ == "__main__":
    NUM_NODES = 8
    NUM_EDGES = 16
    IN_CHANNELS = 4
    HIDDEN_CHANNELS = 32
    OUT_CHANNELS = 16
    NUM_RELATIONS = 3

    key = jax.random.PRNGKey(0)
    k_x, k_src, k_dst, k_rel, k_par = jax.random.split(key, 5)

    x = jax.random.normal(k_x, (NUM_NODES, IN_CHANNELS), jnp.float32)
    edge_index = jnp.stack(
        [
            jax.random.randint(k_src, (NUM_EDGES,), 0, NUM_NODES),
            jax.random.randint(k_dst, (NUM_EDGES,), 0, NUM_NODES),
        ],
        axis=0,
    ).astype(jnp.int32)
    edge_type = jax.random.randint(k_rel, (NUM_EDGES,), 0, NUM_RELATIONS).astype(jnp.int32)

    params = init_params(k_par, IN_CHANNELS, HIDDEN_CHANNELS, OUT_CHANNELS, NUM_RELATIONS)

    # ---- host-side packing: done ONCE per (graph, weights), outside the call path ----
    n_pad = ((NUM_NODES + ROW_TILE - 1) // ROW_TILE) * ROW_TILE
    adj = build_norm_adj(edge_index, edge_type, NUM_NODES, NUM_RELATIONS)
    adj_cat = pack_adj(adj, NUM_NODES, NUM_RELATIONS, n_pad)
    packed = pack_params(params, NUM_RELATIONS, HIDDEN_CHANNELS)
    x_p = _pad_to(x, (n_pad, LANE)).astype(jnp.bfloat16)

    out = rgcn_forward_packed(x_p, adj_cat, packed,
                              num_nodes=NUM_NODES, out_channels=OUT_CHANNELS,
                              num_rel1=NUM_RELATIONS + 1, n_pad=n_pad)
    out = jax.block_until_ready(out)

    ref = rgcn_forward_ref(params, x, adj)
    assert out.shape == (NUM_NODES, OUT_CHANNELS)
    assert jnp.allclose(out, ref, atol=2e-2, rtol=2e-2), "Pallas output mismatch vs JAX reference"

    print("KERNEL_OK")
</pallas_src>

<mosaic_0001>
module attributes {stable_mosaic.version = 11 : i64} {
  func.func @_fused_kernel(%arg0: memref<128x128xbf16, #tpu.memory_space<vmem>>, %arg1: memref<128x512xbf16, #tpu.memory_space<vmem>>, %arg2: memref<128x128xbf16, #tpu.memory_space<vmem>>, %arg3: memref<1x128xf32, #tpu.memory_space<vmem>>, %arg4: memref<128x512xbf16, #tpu.memory_space<vmem>>, %arg5: memref<1x128xf32, #tpu.memory_space<vmem>>, %arg6: memref<128x512xbf16, #tpu.memory_space<vmem>>, %arg7: memref<1x128xf32, #tpu.memory_space<vmem>>, %arg8: memref<128x128xbf16, #tpu.memory_space<vmem>>, %arg9: memref<1x128xf32, #tpu.memory_space<vmem>>, %arg10: memref<128x128xf32, #tpu.memory_space<vmem>>) attributes {dimension_semantics = [], scalar_prefetch = 0 : i64, scratch_operands = 0 : i64, tpu.core_type = #tpu.core_type<tc>} {
    %c0 = arith.constant 0 : index
    %c0_0 = arith.constant 0 : index
    %0 = vector.load %arg0[%c0, %c0_0] : memref<128x128xbf16, #tpu.memory_space<vmem>>, vector<128x128xbf16>
    %c0_1 = arith.constant 0 : index
    %c0_2 = arith.constant 0 : index
    %1 = vector.load %arg2[%c0_1, %c0_2] : memref<128x128xbf16, #tpu.memory_space<vmem>>, vector<128x128xbf16>
    %cst = arith.constant dense<0.000000e+00> : vector<128x128xf32>
    %2 = tpu.matmul %0, %1, %cst {dimension_numbers = #tpu.dot_dimension_numbers<[1], [0], [0], [1], [0, 0, 1, 1], [], []>} : vector<128x128xbf16>, vector<128x128xbf16>, vector<128x128xf32> -> vector<128x128xf32>
    %c0_3 = arith.constant 0 : index
    %c0_4 = arith.constant 0 : index
    %3 = vector.load %arg3[%c0_3, %c0_4] : memref<1x128xf32, #tpu.memory_space<vmem>>, vector<1x128xf32>
    %4 = vector.broadcast %3 : vector<1x128xf32> to vector<128x128xf32>
    %5 = arith.addf %2, %4 : vector<128x128xf32>
    %cst_5 = arith.constant 0.000000e+00 : f32
    %6 = vector.broadcast %cst_5 : f32 to vector<128x128xf32>
    %7 = arith.cmpf oge, %5, %6 : vector<128x128xf32>
    %cst_6 = arith.constant 0.00999999977 : f32
    %8 = vector.broadcast %cst_6 : f32 to vector<128x128xf32>
    %9 = arith.mulf %8, %5 : vector<128x128xf32>
    %10 = arith.select %7, %5, %9 : vector<128x128xi1>, vector<128x128xf32>
    %11 = arith.truncf %10 : vector<128x128xf32> to vector<128x128xbf16>
    %c0_7 = arith.constant 0 : index
    %c0_8 = arith.constant 0 : index
    %12 = vector.load %arg4[%c0_7, %c0_8] : memref<128x512xbf16, #tpu.memory_space<vmem>>, vector<128x128xbf16>
    %cst_9 = arith.constant dense<0.000000e+00> : vector<128x128xf32>
    %13 = tpu.matmul %11, %12, %cst_9 {dimension_numbers = #tpu.dot_dimension_numbers<[1], [0], [0], [1], [0, 0, 1, 1], [], []>} : vector<128x128xbf16>, vector<128x128xbf16>, vector<128x128xf32> -> vector<128x128xf32>
    %c0_10 = arith.constant 0 : index
    %c0_11 = arith.constant 0 : index
    %14 = vector.load %arg1[%c0_10, %c0_11] : memref<128x512xbf16, #tpu.memory_space<vmem>>, vector<128x128xbf16>
    %15 = arith.truncf %13 : vector<128x128xf32> to vector<128x128xbf16>
    %cst_12 = arith.constant dense<0.000000e+00> : vector<128x128xf32>
    %16 = tpu.matmul %14, %15, %cst_12 {dimension_numbers = #tpu.dot_dimension_numbers<[1], [0], [0], [1], [0, 0, 1, 1], [], []>} : vector<128x128xbf16>, vector<128x128xbf16>, vector<128x128xf32> -> vector<128x128xf32>
    %c0_13 = arith.constant 0 : index
    %c128 = arith.constant 128 : index
    %17 = vector.load %arg4[%c0_13, %c128] : memref<128x512xbf16, #tpu.memory_space<vmem>>, vector<128x128xbf16>
    %cst_14 = arith.constant dense<0.000000e+00> : vector<128x128xf32>
    %18 = tpu.matmul %11, %17, %cst_14 {dimension_numbers = #tpu.dot_dimension_numbers<[1], [0], [0], [1], [0, 0, 1, 1], [], []>} : vector<128x128xbf16>, vector<128x128xbf16>, vector<128x128xf32> -> vector<128x128xf32>
    %c0_15 = arith.constant 0 : index
    %c128_16 = arith.constant 128 : index
    %19 = vector.load %arg1[%c0_15, %c128_16] : memref<128x512xbf16, #tpu.memory_space<vmem>>, vector<128x128xbf16>
    %20 = arith.truncf %18 : vector<128x128xf32> to vector<128x128xbf16>
    %cst_17 = arith.constant dense<0.000000e+00> : vector<128x128xf32>
    %21 = tpu.matmul %19, %20, %cst_17 {dimension_numbers = #tpu.dot_dimension_numbers<[1], [0], [0], [1], [0, 0, 1, 1], [], []>} : vector<128x128xbf16>, vector<128x128xbf16>, vector<128x128xf32> -> vector<128x128xf32>
    %22 = arith.addf %16, %21 : vector<128x128xf32>
    %c0_18 = arith.constant 0 : index
    %c256 = arith.constant 256 : index
    %23 = vector.load %arg4[%c0_18, %c256] : memref<128x512xbf16, #tpu.memory_space<vmem>>, vector<128x128xbf16>
    %cst_19 = arith.constant dense<0.000000e+00> : vector<128x128xf32>
    %24 = tpu.matmul %11, %23, %cst_19 {dimension_numbers = #tpu.dot_dimension_numbers<[1], [0], [0], [1], [0, 0, 1, 1], [], []>} : vector<128x128xbf16>, vector<128x128xbf16>, vector<128x128xf32> -> vector<128x128xf32>
    %c0_20 = arith.constant 0 : index
    %c256_21 = arith.constant 256 : index
    %25 = vector.load %arg1[%c0_20, %c256_21] : memref<128x512xbf16, #tpu.memory_space<vmem>>, vector<128x128xbf16>
    %26 = arith.truncf %24 : vector<128x128xf32> to vector<128x128xbf16>
    %cst_22 = arith.constant dense<0.000000e+00> : vector<128x128xf32>
    %27 = tpu.matmul %25, %26, %cst_22 {dimension_numbers = #tpu.dot_dimension_numbers<[1], [0], [0], [1], [0, 0, 1, 1], [], []>} : vector<128x128xbf16>, vector<128x128xbf16>, vector<128x128xf32> -> vector<128x128xf32>
    %28 = arith.addf %22, %27 : vector<128x128xf32>
    %c0_23 = arith.constant 0 : index
    %c384 = arith.constant 384 : index
    %29 = vector.load %arg4[%c0_23, %c384] : memref<128x512xbf16, #tpu.memory_space<vmem>>, vector<128x128xbf16>
    %cst_24 = arith.constant dense<0.000000e+00> : vector<128x128xf32>
    %30 = tpu.matmul %11, %29, %cst_24 {dimension_numbers = #tpu.dot_dimension_numbers<[1], [0], [0], [1], [0, 0, 1, 1], [], []>} : vector<128x128xbf16>, vector<128x128xbf16>, vector<128x128xf32> -> vector<128x128xf32>
    %c0_25 = arith.constant 0 : index
    %c384_26 = arith.constant 384 : index
    %31 = vector.load %arg1[%c0_25, %c384_26] : memref<128x512xbf16, #tpu.memory_space<vmem>>, vector<128x128xbf16>
    %32 = arith.truncf %30 : vector<128x128xf32> to vector<128x128xbf16>
    %cst_27 = arith.constant dense<0.000000e+00> : vector<128x128xf32>
    %33 = tpu.matmul %31, %32, %cst_27 {dimension_numbers = #tpu.dot_dimension_numbers<[1], [0], [0], [1], [0, 0, 1, 1], [], []>} : vector<128x128xbf16>, vector<128x128xbf16>, vector<128x128xf32> -> vector<128x128xf32>
    %34 = arith.addf %28, %33 : vector<128x128xf32>
    %c0_28 = arith.constant 0 : index
    %c0_29 = arith.constant 0 : index
    %35 = vector.load %arg5[%c0_28, %c0_29] : memref<1x128xf32, #tpu.memory_space<vmem>>, vector<1x128xf32>
    %36 = vector.broadcast %35 : vector<1x128xf32> to vector<128x128xf32>
    %37 = arith.addf %34, %36 : vector<128x128xf32>
    %38 = arith.truncf %37 : vector<128x128xf32> to vector<128x128xbf16>
    %c0_30 = arith.constant 0 : index
    %c0_31 = arith.constant 0 : index
    %39 = vector.load %arg6[%c0_30, %c0_31] : memref<128x512xbf16, #tpu.memory_space<vmem>>, vector<128x128xbf16>
    %cst_32 = arith.constant dense<0.000000e+00> : vector<128x128xf32>
    %40 = tpu.matmul %38, %39, %cst_32 {dimension_numbers = #tpu.dot_dimension_numbers<[1], [0], [0], [1], [0, 0, 1, 1], [], []>} : vector<128x128xbf16>, vector<128x128xbf16>, vector<128x128xf32> -> vector<128x128xf32>
    %c0_33 = arith.constant 0 : index
    %c0_34 = arith.constant 0 : index
    %41 = vector.load %arg1[%c0_33, %c0_34] : memref<128x512xbf16, #tpu.memory_space<vmem>>, vector<128x128xbf16>
    %42 = arith.truncf %40 : vector<128x128xf32> to vector<128x128xbf16>
    %cst_35 = arith.constant dense<0.000000e+00> : vector<128x128xf32>
    %43 = tpu.matmul %41, %42, %cst_35 {dimension_numbers = #tpu.dot_dimension_numbers<[1], [0], [0], [1], [0, 0, 1, 1], [], []>} : vector<128x128xbf16>, vector<128x128xbf16>, vector<128x128xf32> -> vector<128x128xf32>
    %c0_36 = arith.constant 0 : index
    %c128_37 = arith.constant 128 : index
    %44 = vector.load %arg6[%c0_36, %c128_37] : memref<128x512xbf16, #tpu.memory_space<vmem>>, vector<128x128xbf16>
    %cst_38 = arith.constant dense<0.000000e+00> : vector<128x128xf32>
    %45 = tpu.matmul %38, %44, %cst_38 {dimension_numbers = #tpu.dot_dimension_numbers<[1], [0], [0], [1], [0, 0, 1, 1], [], []>} : vector<128x128xbf16>, vector<128x128xbf16>, vector<128x128xf32> -> vector<128x128xf32>
    %c0_39 = arith.constant 0 : index
    %c128_40 = arith.constant 128 : index
    %46 = vector.load %arg1[%c0_39, %c128_40] : memref<128x512xbf16, #tpu.memory_space<vmem>>, vector<128x128xbf16>
    %47 = arith.truncf %45 : vector<128x128xf32> to vector<128x128xbf16>
    %cst_41 = arith.constant dense<0.000000e+00> : vector<128x128xf32>
    %48 = tpu.matmul %46, %47, %cst_41 {dimension_numbers = #tpu.dot_dimension_numbers<[1], [0], [0], [1], [0, 0, 1, 1], [], []>} : vector<128x128xbf16>, vector<128x128xbf16>, vector<128x128xf32> -> vector<128x128xf32>
    %49 = arith.addf %43, %48 : vector<128x128xf32>
    %c0_42 = arith.constant 0 : index
    %c256_43 = arith.constant 256 : index
    %50 = vector.load %arg6[%c0_42, %c256_43] : memref<128x512xbf16, #tpu.memory_space<vmem>>, vector<128x128xbf16>
    %cst_44 = arith.constant dense<0.000000e+00> : vector<128x128xf32>
    %51 = tpu.matmul %38, %50, %cst_44 {dimension_numbers = #tpu.dot_dimension_numbers<[1], [0], [0], [1], [0, 0, 1, 1], [], []>} : vector<128x128xbf16>, vector<128x128xbf16>, vector<128x128xf32> -> vector<128x128xf32>
    %c0_45 = arith.constant 0 : index
    %c256_46 = arith.constant 256 : index
    %52 = vector.load %arg1[%c0_45, %c256_46] : memref<128x512xbf16, #tpu.memory_space<vmem>>, vector<128x128xbf16>
    %53 = arith.truncf %51 : vector<128x128xf32> to vector<128x128xbf16>
    %cst_47 = arith.constant dense<0.000000e+00> : vector<128x128xf32>
    %54 = tpu.matmul %52, %53, %cst_47 {dimension_numbers = #tpu.dot_dimension_numbers<[1], [0], [0], [1], [0, 0, 1, 1], [], []>} : vector<128x128xbf16>, vector<128x128xbf16>, vector<128x128xf32> -> vector<128x128xf32>
    %55 = arith.addf %49, %54 : vector<128x128xf32>
    %c0_48 = arith.constant 0 : index
    %c384_49 = arith.constant 384 : index
    %56 = vector.load %arg6[%c0_48, %c384_49] : memref<128x512xbf16, #tpu.memory_space<vmem>>, vector<128x128xbf16>
    %cst_50 = arith.constant dense<0.000000e+00> : vector<128x128xf32>
    %57 = tpu.matmul %38, %56, %cst_50 {dimension_numbers = #tpu.dot_dimension_numbers<[1], [0], [0], [1], [0, 0, 1, 1], [], []>} : vector<128x128xbf16>, vector<128x128xbf16>, vector<128x128xf32> -> vector<128x128xf32>
    %c0_51 = arith.constant 0 : index
    %c384_52 = arith.constant 384 : index
    %58 = vector.load %arg1[%c0_51, %c384_52] : memref<128x512xbf16, #tpu.memory_space<vmem>>, vector<128x128xbf16>
    %59 = arith.truncf %57 : vector<128x128xf32> to vector<128x128xbf16>
    %cst_53 = arith.constant dense<0.000000e+00> : vector<128x128xf32>
    %60 = tpu.matmul %58, %59, %cst_53 {dimension_numbers = #tpu.dot_dimension_numbers<[1], [0], [0], [1], [0, 0, 1, 1], [], []>} : vector<128x128xbf16>, vector<128x128xbf16>, vector<128x128xf32> -> vector<128x128xf32>
    %61 = arith.addf %55, %60 : vector<128x128xf32>
    %c0_54 = arith.constant 0 : index
    %c0_55 = arith.constant 0 : index
    %62 = vector.load %arg7[%c0_54, %c0_55] : memref<1x128xf32, #tpu.memory_space<vmem>>, vector<1x128xf32>
    %63 = vector.broadcast %62 : vector<1x128xf32> to vector<128x128xf32>
    %64 = arith.addf %61, %63 : vector<128x128xf32>
    %65 = arith.truncf %64 : vector<128x128xf32> to vector<128x128xbf16>
    %c0_56 = arith.constant 0 : index
    %c0_57 = arith.constant 0 : index
    %66 = vector.load %arg8[%c0_56, %c0_57] : memref<128x128xbf16, #tpu.memory_space<vmem>>, vector<128x128xbf16>
    %cst_58 = arith.constant dense<0.000000e+00> : vector<128x128xf32>
    %67 = tpu.matmul %65, %66, %cst_58 {dimension_numbers = #tpu.dot_dimension_numbers<[1], [0], [0], [1], [0, 0, 1, 1], [], []>} : vector<128x128xbf16>, vector<128x128xbf16>, vector<128x128xf32> -> vector<128x128xf32>
    %c0_59 = arith.constant 0 : index
    %c0_60 = arith.constant 0 : index
    %68 = vector.load %arg9[%c0_59, %c0_60] : memref<1x128xf32, #tpu.memory_space<vmem>>, vector<1x128xf32>
    %69 = vector.broadcast %68 : vector<1x128xf32> to vector<128x128xf32>
    %70 = arith.addf %67, %69 : vector<128x128xf32>
    %cst_61 = arith.constant 0.000000e+00 : f32
    %71 = vector.broadcast %cst_61 : f32 to vector<128x128xf32>
    %72 = arith.cmpf oge, %70, %71 : vector<128x128xf32>
    %cst_62 = arith.constant 0.00999999977 : f32
    %73 = vector.broadcast %cst_62 : f32 to vector<128x128xf32>
    %74 = arith.mulf %73, %70 : vector<128x128xf32>
    %75 = arith.select %72, %70, %74 : vector<128x128xi1>, vector<128x128xf32>
    %c0_63 = arith.constant 0 : index
    %c0_64 = arith.constant 0 : index
    %76 = vector.load %arg10[%c0_63, %c0_64] : memref<128x128xf32, #tpu.memory_space<vmem>>, vector<128x128xf32>
    tpu.vector_store %arg10[%c0_63, %c0_64], %75 {strides = array<i32>} : memref<128x128xf32, #tpu.memory_space<vmem>>, vector<128x128xf32>,
    return
  }
}

</mosaic_0001>

<bundles_post_ra>
// kernel: rgcn_forward_packed.1
= control target key start
LH: loop header
LB: loop body
LE: loop exit
PB: predicated region body
PF: predicated region fallthrough
CT: control target
= control target key end

     0   :  { %15 = vsyncpa [#allocation3], 0  ;;  %s5072_s0 = inlined_call_operand.hbm [shape: bf16[128,128], index: 0, kind: input, shape index: {}]   ;;  %s5073_s1 = inlined_call_operand.hbm [shape: bf16[128,512], index: 1, kind: input, shape index: {}]   ;;  %s5074_s2 = inlined_call_operand.hbm [shape: bf16[128,128], index: 2, kind: input, shape index: {}]   ;;  %s5075_s3 = inlined_call_operand.vmem [shape: f32[1,128], index: 3, kind: input, shape index: {}]   ;;  %s5076_s4 = inlined_call_operand.hbm [shape: bf16[128,512], index: 4, kind: input, shape index: {}]   ;;  %s5077_s5 = inlined_call_operand.vmem [shape: f32[1,128], index: 5, kind: input, shape index: {}]   ;;  %s5078_s6 = inlined_call_operand.hbm [shape: bf16[128,512], index: 6, kind: input, shape index: {}]   ;;  %s5079_s7 = inlined_call_operand.vmem [shape: f32[1,128], index: 7, kind: input, shape index: {}]   ;;  %s5080_s8 = inlined_call_operand.hbm [shape: bf16[128,128], index: 8, kind: input, shape index: {}]   ;;  %s5081_s9 = inlined_call_operand.vmem [shape: f32[1,128], index: 9, kind: input, shape index: {}]   ;;  %s5082_s10 = inlined_call_operand.vmem [shape: f32[128,128], index: 10, kind: output, shape index: {}]  }
   0x1   :  { %16 = vsyncpa [#allocation5], 0 }
   0x2   :  { %17 = vsyncpa [#allocation8], 0 }
   0x3   :  { %18 = vsyncpa [#allocation11], 0  ;;  %s4402_s13 = smov [#allocation4]  }
   0x4   :  { %s36_s14 = sshll.u32 %s4402_s13, 4  ;;  %s37_s14 = int_to_ptr.vmem [resolvable:$true] %s36_s14 }
   0x5   :  { %s4282_s15 = scalar_lea.vmem %s37_s14, 4096  ;;  %p4287_p1 = scmp.lt.s32.totalorder %s37_s14, %s37_s14 }
   0x6   :  { %p4283_p0 = scmp.ne.s32.totalorder %s37_s14, %s4282_s15  ;;  %p4288_p2 = scmp.lt.s32.totalorder %s4282_s15, %s4282_s15 }
   0x8   :  { %p4289_p3 = por %p4288_p2, %p4287_p1 }
   0xa   :  { %p4290_p4 = pnand %p4289_p3, %p4283_p0 }
   0xc   :  { %4293 = shalt.err (!%p4290_p4)
}
   0xd   :  { %s4403_s16 = smov 256   ;;  %s4404_s17 = smov 16  }
   0xe   :  { %42 = dma.hbm_to_vmem [thread:$0]  %s5073_s1, 4096, %s37_s14, [#allocation5], %s4403_s16, %s4403_s16, %s4404_s17  }
   0xf   :  { %s4405_s20 = smov [#allocation7]   ;;  %s4406_s22 = smov [#allocation2]  }
  0x10   :  { %s62_s21 = sshll.u32 %s4405_s20, 4  ;;  %s24_s23 = sshll.u32 %s4406_s22, 4  ;;  %s63_s21 = int_to_ptr.vmem [resolvable:$true] %s62_s21  ;;  %s25_s23 = int_to_ptr.vmem [resolvable:$true] %s24_s23 }
  0x11   :  { %s4302_s24 = scalar_lea.vmem %s63_s21, 4096  ;;  %p4307_p6 = scmp.lt.s32.totalorder %s63_s21, %s63_s21 }
  0x12   :  { %p4303_p5 = scmp.ne.s32.totalorder %s63_s21, %s4302_s24  ;;  %p4308_p7 = scmp.lt.s32.totalorder %s4302_s24, %s4302_s24 }
  0x14   :  { %p4309_p8 = por %p4308_p7, %p4307_p6 }
  0x16   :  { %p4310_p9 = pnand %p4309_p8, %p4303_p5 }
  0x18   :  { %4313 = shalt.err (!%p4310_p9)
}
  0x19   :  { %68 = dma.hbm_to_vmem [thread:$0]  %s5076_s4, 4096, %s63_s21, [#allocation8], %s4403_s16, %s4403_s16, %s4404_s17  }
  0x1a   :  { %s4322_s1 = scalar_lea.vmem %s25_s23, 1024  ;;  %p4327_p11 = scmp.lt.s32.totalorder %s25_s23, %s25_s23 }
  0x1b   :  { %p4323_p10 = scmp.ne.s32.totalorder %s25_s23, %s4322_s1  ;;  %p4328_p12 = scmp.lt.s32.totalorder %s4322_s1, %s4322_s1 }
  0x1d   :  { %p4329_p13 = por %p4328_p12, %p4327_p11 }
  0x1f   :  { %p4330_p0 = pnand %p4329_p13, %p4323_p10 }
  0x21   :  { %4333 = shalt.err (!%p4330_p0)
}
  0x22   :  { %s4407_s27 = smov 64   ;;  %s4408_s28 = smov 4  }
  0x23   :  { %30 = dma.hbm_to_vmem [thread:$0]  %s5072_s0, 1024, %s25_s23, [#allocation3], %s4407_s27, %s4407_s27, %s4408_s28  }
  0x24   :  { %s4409_s11 = smov [#allocation6]   ;;  %s4410_s4 = smov [#allocation9]  }
  0x25   :  { %s48_s12 = sshll.u32 %s4409_s11, 4  ;;  %s76_s13 = sshll.u32 %s4410_s4, 4  ;;  %s49_s12 = int_to_ptr.vmem [resolvable:$true] %s48_s12  ;;  %s77_s13 = int_to_ptr.vmem [resolvable:$true] %s76_s13 }
  0x26   :  { %s4342_s14 = scalar_lea.vmem %s49_s12, 1024  ;;  %p4347_p2 = scmp.lt.s32.totalorder %s49_s12, %s49_s12 }
  0x27   :  { %p4343_p1 = scmp.ne.s32.totalorder %s49_s12, %s4342_s14  ;;  %p4348_p3 = scmp.lt.s32.totalorder %s4342_s14, %s4342_s14 }
  0x29   :  { %p4349_p4 = por %p4348_p3, %p4347_p2 }
  0x2b   :  { %p4350_p5 = pnand %p4349_p4, %p4343_p1 }
  0x2d   :  { %4353 = shalt.err (!%p4350_p5)
}
  0x2e   :  { %54 = dma.hbm_to_vmem [thread:$0]  %s5074_s2, 1024, %s49_s12, [#allocation5], %s4407_s27, %s4407_s27, %s4408_s28  }
  0x2f   :  { %s4362_s0 = scalar_lea.vmem %s77_s13, 4096  ;;  %p4367_p7 = scmp.lt.s32.totalorder %s77_s13, %s77_s13 }
  0x30   :  { %p4363_p6 = scmp.ne.s32.totalorder %s77_s13, %s4362_s0  ;;  %p4368_p8 = scmp.lt.s32.totalorder %s4362_s0, %s4362_s0 }
  0x32   :  { %p4369_p9 = por %p4368_p8, %p4367_p7 }
  0x34   :  { %p4370_p10 = pnand %p4369_p9, %p4363_p6 }
  0x36   :  { %4373 = shalt.err (!%p4370_p10)
}
  0x37   :  { %82 = dma.hbm_to_vmem [thread:$0]  %s5078_s6, 4096, %s77_s13, [#allocation8], %s4403_s16, %s4403_s16, %s4404_s17  }
  0x38   :  { %s4411_s21 = smov [#allocation10]  }
  0x39   :  { %s90_s22 = sshll.u32 %s4411_s21, 4  ;;  %s91_s22 = int_to_ptr.vmem [resolvable:$true] %s90_s22 }
  0x3a   :  { %s4382_s23 = scalar_lea.vmem %s91_s22, 1024  ;;  %p4387_p12 = scmp.lt.s32.totalorder %s91_s22, %s91_s22 }
  0x3b   :  { %p4383_p11 = scmp.ne.s32.totalorder %s91_s22, %s4382_s23  ;;  %p4388_p13 = scmp.lt.s32.totalorder %s4382_s23, %s4382_s23 }
  0x3d   :  { %p4389_p0 = por %p4388_p13, %p4387_p12 }
  0x3f   :  { %p4390_p1 = pnand %p4389_p0, %p4383_p11 }
  0x41   :  { %4393 = shalt.err (!%p4390_p1)
}
  0x42   :  { %96 = dma.hbm_to_vmem [thread:$0]  %s5080_s8, 1024, %s91_s22, [#allocation11], %s4407_s27, %s4407_s27, %s4408_s28  }
  0x43   :  { %4394 = dma.done.wait [#allocation3], 1024  }
  0x44   :  { %4395 = vsyncadd [#allocation3], 4294966272 }
  0x45   :  { %4396 = dma.done.wait [#allocation5], 5120  }
  0x46   :  { %4397 = vsyncadd [#allocation5], 4294962176 }
  0x47   :  { %4398 = dma.done.wait [#allocation8], 8192  }
  0x48   :  { %4399 = vsyncadd [#allocation8], 4294959104 }
  0x49   :  { %4400 = dma.done.wait [#allocation11], 1024  }
  0x4a   :  { %4401 = vsyncadd [#allocation11], 4294966272  ;;  %v4154_v0 = vld [vmem:[#allocation6 + $0x38] sm:$0xff]   ;;  %v4155_v1 = vld [vmem:[#allocation6 + $0x30] sm:$0xff]  }
  0x4b   :  { %3568 = vmatprep.subr.bf16.mxu0 %v4154_v0  ;;  %v4156_v2 = vld [vmem:[#allocation6 + $0x28] sm:$0xff]   ;;  %v4157_v3 = vld [vmem:[#allocation6 + $0x20] sm:$0xff]   ;;  %v4158_v5 = vld [vmem:[#allocation6 + $0x18] sm:$0xff]  }
  0x4c   :  { %3569 = vmatpush3.bf16.msra.mxu0 %v4154_v0  ;;  %v4162_v4 = vld [vmem:[#allocation2] sm:$0xff]   ;;  %v4159_v6 = vld [vmem:[#allocation6 + $0x10] sm:$0xff]   ;;  %v4160_v9 = vld [vmem:[#allocation6 + $0x8] sm:$0xff]  }
  0x4d   :  { %3570 = vmatprep.subr.bf16.mxu0 %v4155_v1  ;;  %3584 = vmatprep.mubr.bf16.mxu0 %v4162_v4  ;;  %v4170_v7 = vld [vmem:[#allocation7 + $0xe0] ss:$16 sps:$4 sm:$0xff]   ;;  %v4171_v13 = vld [vmem:[#allocation7 + $0xe4] ss:$16 sps:$4 sm:$0xff]   ;;  %v4163_v15 = vld [vmem:[#allocation2 + $0x8] sm:$0xff]  }
  0x4e   :  { %3600 = vmatprep.subr.bf16.mxu1 %v4170_v7  ;;  %v4172_v8 = vld [vmem:[#allocation7 + $0xc0] ss:$16 sps:$4 sm:$0xff]   ;;  %v4173_v17 = vld [vmem:[#allocation7 + $0xc4] ss:$16 sps:$4 sm:$0xff]   ;;  %v4165_v19 = vld [vmem:[#allocation2 + $0x18] sm:$0xff]  }
  0x4f   :  { %3601 = vmatpush3.bf16.msra.mxu1 %v4170_v7  ;;  %v4174_v10 = vld [vmem:[#allocation7 + $0xa0] ss:$16 sps:$4 sm:$0xff]   ;;  %v4175_v18 = vld [vmem:[#allocation7 + $0xa4] ss:$16 sps:$4 sm:$0xff]   ;;  %v4167_v23 = vld [vmem:[#allocation2 + $0x28] sm:$0xff]  }
  0x50   :  { %3571 = vmatpush3.bf16.msra.mxu0 %v4155_v1  ;;  %3602 = vmatprep.subr.bf16.mxu1 %v4172_v8  ;;  %v4161_v11 = vld [vmem:[#allocation6] sm:$0xff]   ;;  %v4164_v16 = vld [vmem:[#allocation2 + $0x10] sm:$0xff]   ;;  %v4169_v25 = vld [vmem:[#allocation2 + $0x38] sm:$0xff]  }
  0x51   :  { %3572 = vmatprep.subr.bf16.mxu0 %v4156_v2  ;;  %v4176_v12 = vld [vmem:[#allocation7 + $0x80] ss:$16 sps:$4 sm:$0xff]   ;;  %v4177_v21 = vld [vmem:[#allocation7 + $0x84] ss:$16 sps:$4 sm:$0xff]  }
  0x52   :  { %v4178_v14 = vld [vmem:[#allocation7 + $0x60] ss:$16 sps:$4 sm:$0xff]   ;;  %v4179_v22 = vld [vmem:[#allocation7 + $0x64] ss:$16 sps:$4 sm:$0xff]  }
  0x53   :  { %3603 = vmatpush3.bf16.msra.mxu1 %v4172_v8  ;;  %v4166_v20 = vld [vmem:[#allocation2 + $0x20] sm:$0xff]   ;;  %v4168_v24 = vld [vmem:[#allocation2 + $0x30] sm:$0xff]  }
  0x54   :  { %3573 = vmatpush3.bf16.msra.mxu0 %v4156_v2  ;;  %3604 = vmatprep.subr.bf16.mxu1 %v4174_v10  ;;  %v4180_v26 = vld [vmem:[#allocation7 + $0x40] ss:$16 sps:$4 sm:$0xff]   ;;  %v4181_v27 = vld [vmem:[#allocation7 + $0x44] ss:$16 sps:$4 sm:$0xff]  }
  0x55   :  { %3574 = vmatprep.subr.bf16.mxu0 %v4157_v3  ;;  %v4182_v28 = vld [vmem:[#allocation7 + $0x20] ss:$16 sps:$4 sm:$0xff]   ;;  %v4183_v29 = vld [vmem:[#allocation7 + $0x24] ss:$16 sps:$4 sm:$0xff]  }
  0x56   :  { %v4184_v30 = vld [vmem:[#allocation7] ss:$16 sps:$4 sm:$0xff]   ;;  %v4185_v31 = vld [vmem:[#allocation7 + $0x4] ss:$16 sps:$4 sm:$0xff]  }
  0x57   :  { %3605 = vmatpush3.bf16.msra.mxu1 %v4174_v10  ;;  %v4506_v33 = vld [vmem:[%s5075_s3] ss:$0 sm:$0xff] }
  0x58   :  { %3575 = vmatpush3.bf16.msra.mxu0 %v4157_v3  ;;  %3606 = vmatprep.subr.bf16.mxu1 %v4176_v12 }
  0x59   :  { %3576 = vmatprep.subr.bf16.mxu0 %v4158_v5 }
  0x5b   :  { %3607 = vmatpush3.bf16.msra.mxu1 %v4176_v12 }
  0x5c   :  { %3577 = vmatpush3.bf16.msra.mxu0 %v4158_v5  ;;  %3608 = vmatprep.subr.bf16.mxu1 %v4178_v14 }
  0x5d   :  { %3578 = vmatprep.subr.bf16.mxu0 %v4159_v6 }
  0x5f   :  { %3609 = vmatpush3.bf16.msra.mxu1 %v4178_v14 }
  0x60   :  { %3579 = vmatpush3.bf16.msra.mxu0 %v4159_v6  ;;  %3610 = vmatprep.subr.bf16.mxu1 %v4180_v26 }
  0x61   :  { %3580 = vmatprep.subr.bf16.mxu0 %v4160_v9 }
  0x63   :  { %3611 = vmatpush3.bf16.msra.mxu1 %v4180_v26 }
  0x64   :  { %3581 = vmatpush3.bf16.msra.mxu0 %v4160_v9  ;;  %3612 = vmatprep.subr.bf16.mxu1 %v4182_v28 }
  0x65   :  { %3582 = vmatprep.subr.bf16.mxu0 %v4161_v11 }
  0x67   :  { %3613 = vmatpush3.bf16.msra.mxu1 %v4182_v28 }
  0x68   :  { %3583 = vmatpush3.bf16.msra.mxu0 %v4161_v11  ;;  %3614 = vmatprep.subr.bf16.mxu1 %v4184_v30 }
  0x69   :  { %3632 = vmatprep.subr.bf16.mxu0 %v4171_v13 }
  0x6b   :  { %3585 = vmatmul.mubr.bf16.vlgmr.msra.gmra.mxu0 %v4163_v15  ;;  %3615 = vmatpush3.bf16.msra.mxu1 %v4184_v30 }
  0x6c   :  { %3588 = vmatprep.mubr.bf16.mxu0 %v4164_v16  ;;  %3633 = vmatpush3.bf16.msra.mxu0 %v4171_v13 }
  0x6d   :  { %3634 = vmatprep.subr.bf16.mxu0 %v4173_v17 }
  0x70   :  { %3635 = vmatpush3.bf16.msra.mxu0 %v4173_v17 }
  0x71   :  { %3636 = vmatprep.subr.bf16.mxu0 %v4175_v18 }
  0x73   :  { %3589 = vmatmul.mubr.bf16.gmra.mxu0 %v4165_v19 }
  0x74   :  { %3592 = vmatprep.mubr.bf16.mxu0 %v4166_v20  ;;  %3637 = vmatpush3.bf16.msra.mxu0 %v4175_v18 }
  0x75   :  { %3638 = vmatprep.subr.bf16.mxu0 %v4177_v21 }
  0x78   :  { %3639 = vmatpush3.bf16.msra.mxu0 %v4177_v21 }
  0x79   :  { %3640 = vmatprep.subr.bf16.mxu0 %v4179_v22 }
  0x7b   :  { %3593 = vmatmul.mubr.bf16.gmra.mxu0 %v4167_v23 }
  0x7c   :  { %3596 = vmatprep.mubr.bf16.mxu0 %v4168_v24  ;;  %3641 = vmatpush3.bf16.msra.mxu0 %v4179_v22 }
  0x7d   :  { %3642 = vmatprep.subr.bf16.mxu0 %v4181_v27 }
  0x80   :  { %3643 = vmatpush3.bf16.msra.mxu0 %v4181_v27 }
  0x81   :  { %3644 = vmatprep.subr.bf16.mxu0 %v4183_v29 }
  0x83   :  { %3597 = vmatmul.mubr.bf16.gmra.mxu0 %v4169_v25 }
  0x84   :  { %3645 = vmatpush3.bf16.msra.mxu0 %v4183_v29 }
  0x85   :  { %3646 = vmatprep.subr.bf16.mxu0 %v4185_v31 }
  0x88   :  { %3647 = vmatpush3.bf16.msra.mxu0 %v4185_v31 }
 0x12b   :  { %v3586_v32 = vpop.f32.mrf.mxu0 }
 0x12c   :  { %v296_v36 = vadd.f32 %v3586_v32, %v4506_v33 }
 0x12d   :  { %v287_v34 = vpop.f32.mrf.mxu0 }
 0x12e   :  { %v288_v35 = vadd.f32 %v4506_v33, %v287_v34  ;;  %v368_v43 = vmul.f32 0.01, %v296_v36  ;;  %vm352_vm2 = vcmp.ge.f32.partialorder %v296_v36, 0.0 }
 0x12f   :  { %v3587_v37 = vpop.f32.mrf.mxu0 }
 0x130   :  { %v299_v38 = vadd.f32 %v3587_v37, %v4506_v33  ;;  %v366_v40 = vmul.f32 0.01, %v288_v35  ;;  %vm350_vm1 = vcmp.ge.f32.partialorder %v288_v35, 0.0  ;;  %v384_v51 = vsel %vm352_vm2, %v296_v36, %v368_v43 }
 0x131   :  { %v290_v39 = vpop.f32.mrf.mxu0 }
 0x132   :  { %vm353_vm0 = vcmp.ge.f32.partialorder %v299_v38, 0.0  ;;  %v369_v41 = vmul.f32 0.01, %v299_v38  ;;  %v291_v42 = vadd.f32 %v4506_v33, %v290_v39  ;;  %v382_v48 = vsel %vm350_vm1, %v288_v35, %v366_v40 }
 0x133   :  { %v3590_v44 = vpop.f32.mrf.mxu0 }
 0x134   :  { %vm351_vm3 = vcmp.ge.f32.partialorder %v291_v42, 0.0  ;;  %v367_v45 = vmul.f32 0.01, %v291_v42  ;;  %v385_v46 = vsel %vm353_vm0, %v299_v38, %v369_v41  ;;  %v312_v53 = vadd.f32 %v3590_v44, %v4506_v33 }
 0x135   :  { %v303_v47 = vpop.f32.mrf.mxu0  ;;  %v4516_v55 = vpack.c.bf16 %v385_v46, %v384_v51 }
 0x136   :  { %v383_v49 = vsel %vm351_vm3, %v291_v42, %v367_v45  ;;  %v304_v50 = vadd.f32 %v4506_v33, %v303_v47  ;;  %v372_v61 = vmul.f32 0.01, %v312_v53  ;;  %vm356_vm6 = vcmp.ge.f32.partialorder %v312_v53, 0.0  ;;  %v4558_v42 = vld [vmem:[#allocation4] ss:$16 sps:$4 sm:$0xff]  }
 0x137   :  { %v4513_v52 = vpack.c.bf16 %v383_v49, %v382_v48  ;;  %v3591_v54 = vpop.f32.mrf.mxu0 }
 0x138   :  { %v315_v56 = vadd.f32 %v3591_v54, %v4506_v33  ;;  %v370_v58 = vmul.f32 0.01, %v304_v50  ;;  %vm354_vm5 = vcmp.ge.f32.partialorder %v304_v50, 0.0  ;;  %v388_v5 = vsel %vm356_vm6, %v312_v53, %v372_v61 }
 0x139   :  { %v306_v57 = vpop.f32.mrf.mxu0  ;;  %3616 = vmatprep.mubr.bf16.mxu1 %v4513_v52  ;;  %3648 = vmatprep.mubr.bf16.mxu0 %v4513_v52 }
 0x13a   :  { %vm357_vm4 = vcmp.ge.f32.partialorder %v315_v56, 0.0  ;;  %v373_v59 = vmul.f32 0.01, %v315_v56  ;;  %v307_v60 = vadd.f32 %v4506_v33, %v306_v57  ;;  %3617 = vmatmul.mubr.bf16.vlgmr.msra.gmra.mxu1 %v4516_v55  ;;  %3649 = vmatmul.mubr.bf16.vlgmr.msra.gmra.mxu0 %v4516_v55  ;;  %v386_v2 = vsel %vm354_vm5, %v304_v50, %v370_v58 }
 0x13b   :  { %v3594_v62 = vpop.f32.mrf.mxu0 }
 0x13c   :  { %vm355_vm7 = vcmp.ge.f32.partialorder %v307_v60, 0.0  ;;  %v371_v63 = vmul.f32 0.01, %v307_v60  ;;  %v389_v0 = vsel %vm357_vm4, %v315_v56, %v373_v59  ;;  %v328_v7 = vadd.f32 %v3594_v62, %v4506_v33 }
 0x13d   :  { %v319_v1 = vpop.f32.mrf.mxu0  ;;  %v4528_v9 = vpack.c.bf16 %v389_v0, %v388_v5 }
 0x13e   :  { %v387_v3 = vsel %vm355_vm7, %v307_v60, %v371_v63  ;;  %v320_v4 = vadd.f32 %v4506_v33, %v319_v1  ;;  %v376_v15 = vmul.f32 0.01, %v328_v7  ;;  %vm360_vm10 = vcmp.ge.f32.partialorder %v328_v7, 0.0 }
 0x13f   :  { %v4525_v6 = vpack.c.bf16 %v387_v3, %v386_v2  ;;  %v3595_v8 = vpop.f32.mrf.mxu0 }
 0x140   :  { %v331_v10 = vadd.f32 %v3595_v8, %v4506_v33  ;;  %v374_v12 = vmul.f32 0.01, %v320_v4  ;;  %vm358_vm9 = vcmp.ge.f32.partialorder %v320_v4, 0.0  ;;  %v392_v23 = vsel %vm360_vm10, %v328_v7, %v376_v15 }
 0x141   :  { %v322_v11 = vpop.f32.mrf.mxu0  ;;  %3620 = vmatprep.mubr.bf16.mxu1 %v4525_v6  ;;  %3652 = vmatprep.mubr.bf16.mxu0 %v4525_v6 }
 0x142   :  { %vm361_vm8 = vcmp.ge.f32.partialorder %v331_v10, 0.0  ;;  %v377_v13 = vmul.f32 0.01, %v331_v10  ;;  %v323_v14 = vadd.f32 %v4506_v33, %v322_v11  ;;  %3621 = vmatmul.mubr.bf16.gmra.mxu1 %v4528_v9  ;;  %3653 = vmatmul.mubr.bf16.gmra.mxu0 %v4528_v9  ;;  %v390_v20 = vsel %vm358_vm9, %v320_v4, %v374_v12 }
 0x143   :  { %v3598_v16 = vpop.f32.mrf.mxu0 }
 0x144   :  { %vm359_vm11 = vcmp.ge.f32.partialorder %v323_v14, 0.0  ;;  %v375_v17 = vmul.f32 0.01, %v323_v14  ;;  %v393_v18 = vsel %vm361_vm8, %v331_v10, %v377_v13  ;;  %v344_v25 = vadd.f32 %v3598_v16, %v4506_v33 }
 0x145   :  { %v335_v19 = vpop.f32.mrf.mxu0  ;;  %v4540_v27 = vpack.c.bf16 %v393_v18, %v392_v23 }
 0x146   :  { %v391_v21 = vsel %vm359_vm11, %v323_v14, %v375_v17  ;;  %v336_v22 = vadd.f32 %v4506_v33, %v335_v19  ;;  %v380_v34 = vmul.f32 0.01, %v344_v25  ;;  %vm364_vm14 = vcmp.ge.f32.partialorder %v344_v25, 0.0 }
 0x147   :  { %v4537_v24 = vpack.c.bf16 %v391_v21, %v390_v20  ;;  %v3599_v26 = vpop.f32.mrf.mxu0 }
 0x148   :  { %v347_v28 = vadd.f32 %v3599_v26, %v4506_v33  ;;  %v378_v30 = vmul.f32 0.01, %v336_v22  ;;  %vm362_vm13 = vcmp.ge.f32.partialorder %v336_v22, 0.0  ;;  %v396_v39 = vsel %vm364_vm14, %v344_v25, %v380_v34  ;;  %v4190_v34 = vld [vmem:[#allocation7 + $0xe8] ss:$16 sps:$4 sm:$0xff]  }
 0x149   :  { %v338_v29 = vpop.f32.mrf.mxu0  ;;  %3624 = vmatprep.mubr.bf16.mxu1 %v4537_v24  ;;  %3656 = vmatprep.mubr.bf16.mxu0 %v4537_v24 }
 0x14a   :  { %vm365_vm12 = vcmp.ge.f32.partialorder %v347_v28, 0.0  ;;  %v381_v31 = vmul.f32 0.01, %v347_v28  ;;  %v339_v32 = vadd.f32 %v4506_v33, %v338_v29  ;;  %3625 = vmatmul.mubr.bf16.gmra.mxu1 %v4540_v27  ;;  %3657 = vmatmul.mubr.bf16.gmra.mxu0 %v4540_v27  ;;  %v394_v37 = vsel %vm362_vm13, %v336_v22, %v378_v30  ;;  %v4556_v33 = vld [vmem:[#allocation4 + $0x4] ss:$16 sps:$4 sm:$0xff]  }
 0x14c   :  { %vm363_vm15 = vcmp.ge.f32.partialorder %v339_v32, 0.0  ;;  %v379_v35 = vmul.f32 0.01, %v339_v32  ;;  %v397_v36 = vsel %vm365_vm12, %v347_v28, %v381_v31 }
 0x14d   :  { %v4550_v41 = vpack.c.bf16 %v397_v36, %v396_v39  ;;  %v4582_v36 = vld [vmem:[#allocation4 + $0x20] ss:$16 sps:$4 sm:$0xff]  }
 0x14e   :  { %v395_v38 = vsel %vm363_vm15, %v339_v32, %v379_v35  ;;  %v4580_v35 = vld [vmem:[#allocation4 + $0x24] ss:$16 sps:$4 sm:$0xff]   ;;  %v4586_v39 = vld [vmem:[#allocation4 + $0x40] ss:$16 sps:$4 sm:$0xff]  }
 0x14f   :  { %v4548_v40 = vpack.c.bf16 %v395_v38, %v394_v37  ;;  %v4584_v37 = vld [vmem:[#allocation4 + $0x44] ss:$16 sps:$4 sm:$0xff]   ;;  %v4191_v38 = vld [vmem:[#allocation7 + $0xc8] ss:$16 sps:$4 sm:$0xff]  }
 0x151   :  { %3628 = vmatprep.mubr.bf16.mxu1 %v4548_v40  ;;  %3660 = vmatprep.mubr.bf16.mxu0 %v4548_v40 }
 0x152   :  { %3629 = vmatmul.mubr.bf16.gmra.mxu1 %v4550_v41  ;;  %3661 = vmatmul.mubr.bf16.gmra.mxu0 %v4550_v41 }
 0x153   :  { %3680 = vmatprep.mubr.bf16.mxu1 %v4556_v33  ;;  %3712 = vmatprep.mubr.bf16.mxu0 %v4558_v42 }
 0x1fa   :  { %v4562_v43 = vpop.f32.mrf.mxu1  ;;  %v4564_v44 = vpop.f32.mrf.mxu0 }
 0x1fc   :  { %v4566_v45 = vpop.f32.mrf.mxu1  ;;  %v4568_v46 = vpop.f32.mrf.mxu0 }
 0x1fe   :  { %v3619_v47 = vpop.f32.mrf.mxu1  ;;  %v3651_v48 = vpop.f32.mrf.mxu0 }
 0x1ff   :  { %v584_v29 = vpack.c.bf16 %v3619_v47, %v4562_v43  ;;  %v769_v30 = vpack.c.bf16 %v3651_v48, %v4564_v44  ;;  %v4196_v43 = vld [vmem:[#allocation7 + $0xa8] ss:$16 sps:$4 sm:$0xff]   ;;  %v4592_v44 = vld [vmem:[#allocation4 + $0x64] ss:$16 sps:$4 sm:$0xff]   ;;  %v4598_v48 = vld [vmem:[#allocation4 + $0x80] ss:$16 sps:$4 sm:$0xff]  }
 0x200   :  { %v4570_v49 = vpop.f32.mrf.mxu1  ;;  %v4572_v50 = vpop.f32.mrf.mxu0  ;;  %v4197_v47 = vld [vmem:[#allocation7 + $0x88] ss:$16 sps:$4 sm:$0xff]  }
 0x201   :  { %v583_v31 = vpack.c.bf16 %v4570_v49, %v4566_v45  ;;  %v768_v32 = vpack.c.bf16 %v4572_v50, %v4568_v46  ;;  %v4594_v45 = vld [vmem:[#allocation4 + $0x60] ss:$16 sps:$4 sm:$0xff]   ;;  %v4596_v46 = vld [vmem:[#allocation4 + $0x84] ss:$16 sps:$4 sm:$0xff]   ;;  %v4202_v49 = vld [vmem:[#allocation7 + $0x68] ss:$16 sps:$4 sm:$0xff]  }
 0x202   :  { %v3622_v51 = vpop.f32.mrf.mxu1  ;;  %v3654_v53 = vpop.f32.mrf.mxu0  ;;  %v4604_v50 = vld [vmem:[#allocation4 + $0xa4] ss:$16 sps:$4 sm:$0xff]  }
 0x204   :  { %v520_v54 = vpop.f32.mrf.mxu1  ;;  %v705_v56 = vpop.f32.mrf.mxu0 }
 0x206   :  { %v3623_v57 = vpop.f32.mrf.mxu1  ;;  %v3655_v58 = vpop.f32.mrf.mxu0 }
 0x207   :  { %v586_v23 = vpack.c.bf16 %v3623_v57, %v3622_v51  ;;  %v771_v25 = vpack.c.bf16 %v3655_v58, %v3654_v53  ;;  %v4606_v51 = vld [vmem:[#allocation4 + $0xa0] ss:$16 sps:$4 sm:$0xff]   ;;  %v4608_v53 = vld [vmem:[#allocation4 + $0xc4] ss:$16 sps:$4 sm:$0xff]   ;;  %v4208_v57 = vld [vmem:[#allocation7 + $0x28] ss:$16 sps:$4 sm:$0xff]  }
 0x208   :  { %v523_v59 = vpop.f32.mrf.mxu1  ;;  %v708_v60 = vpop.f32.mrf.mxu0  ;;  %5104 = vst [vmem:[#allocation16_spill] sm:$0xff] %v4606_v51  ;;  %5105 = vst [vmem:[#allocation17_spill] sm:$0xff] %v4608_v53  ;;  %v4616_v58 = vld [vmem:[#allocation4 + $0xe4] ss:$16 sps:$4 sm:$0xff]  }
 0x209   :  { %v585_v26 = vpack.c.bf16 %v523_v59, %v520_v54  ;;  %v770_v28 = vpack.c.bf16 %v708_v60, %v705_v56  ;;  %v4203_v54 = vld [vmem:[#allocation7 + $0x48] ss:$16 sps:$4 sm:$0xff]   ;;  %v4610_v56 = vld [vmem:[#allocation4 + $0xc0] ss:$16 sps:$4 sm:$0xff]   ;;  %5107 = vst [vmem:[#allocation19_spill] sm:$0xff] %v4616_v58 }
 0x20a   :  { %v3626_v61 = vpop.f32.mrf.mxu1  ;;  %v3658_v62 = vpop.f32.mrf.mxu0  ;;  %5106 = vst [vmem:[#allocation18_spill] sm:$0xff] %v4610_v56  ;;  %v4618_v59 = vld [vmem:[#allocation4 + $0xe0] ss:$16 sps:$4 sm:$0xff]   ;;  %v4209_v60 = vld [vmem:[#allocation7 + $0x8] ss:$16 sps:$4 sm:$0xff]  }
 0x20b   :  { %5108 = vst [vmem:[#allocation20_spill] sm:$0xff] %v4618_v59 }
 0x20c   :  { %v536_v63 = vpop.f32.mrf.mxu1  ;;  %v721_v0 = vpop.f32.mrf.mxu0 }
 0x20e   :  { %v3627_v1 = vpop.f32.mrf.mxu1  ;;  %v3659_v2 = vpop.f32.mrf.mxu0 }
 0x20f   :  { %v588_v19 = vpack.c.bf16 %v3627_v1, %v3626_v61  ;;  %v773_v20 = vpack.c.bf16 %v3659_v2, %v3658_v62  ;;  %v4210_v61 = vld [vmem:[#allocation7 + $0xec] ss:$16 sps:$4 sm:$0xff]  }
 0x210   :  { %v539_v3 = vpop.f32.mrf.mxu1  ;;  %v724_v4 = vpop.f32.mrf.mxu0  ;;  %v4211_v62 = vld [vmem:[#allocation7 + $0xcc] ss:$16 sps:$4 sm:$0xff]  }
 0x211   :  { %v587_v21 = vpack.c.bf16 %v539_v3, %v536_v63  ;;  %v772_v22 = vpack.c.bf16 %v724_v4, %v721_v0  ;;  %v4212_v63 = vld [vmem:[#allocation7 + $0xac] ss:$16 sps:$4 sm:$0xff]  }
 0x212   :  { %v3630_v5 = vpop.f32.mrf.mxu1  ;;  %v3662_v7 = vpop.f32.mrf.mxu0  ;;  %v4213_v0 = vld [vmem:[#allocation7 + $0x8c] ss:$16 sps:$4 sm:$0xff]  }
 0x213   :  { %v4214_v1 = vld [vmem:[#allocation7 + $0x6c] ss:$16 sps:$4 sm:$0xff]  }
 0x214   :  { %v552_v8 = vpop.f32.mrf.mxu1  ;;  %v737_v10 = vpop.f32.mrf.mxu0  ;;  %v4215_v2 = vld [vmem:[#allocation7 + $0x4c] ss:$16 sps:$4 sm:$0xff]  }
 0x215   :  { %v4216_v3 = vld [vmem:[#allocation7 + $0x2c] ss:$16 sps:$4 sm:$0xff]  }
 0x216   :  { %v3631_v11 = vpop.f32.mrf.mxu1  ;;  %v3663_v12 = vpop.f32.mrf.mxu0  ;;  %v4217_v4 = vld [vmem:[#allocation7 + $0xc] ss:$16 sps:$4 sm:$0xff]  }
 0x217   :  { %v590_v13 = vpack.c.bf16 %v3631_v11, %v3630_v5  ;;  %v775_v14 = vpack.c.bf16 %v3663_v12, %v3662_v7  ;;  %v4638_v5 = vld [vmem:[#allocation4 + $0x8] ss:$16 sps:$4 sm:$0xff]  }
 0x218   :  { %v555_v15 = vpop.f32.mrf.mxu1  ;;  %v740_v16 = vpop.f32.mrf.mxu0  ;;  %5109 = vst [vmem:[#allocation21_spill] sm:$0xff] %v4638_v5 }
 0x219   :  { %v589_v17 = vpack.c.bf16 %v555_v15, %v552_v8  ;;  %v774_v18 = vpack.c.bf16 %v740_v16, %v737_v10  ;;  %3664 = vmatprep.subr.bf16.mxu1 %v775_v14  ;;  %3696 = vmatprep.subr.bf16.mxu0 %v590_v13 }
 0x21a   :  { %3665 = vmatpush3.bf16.msra.mxu1 %v775_v14  ;;  %3697 = vmatpush3.bf16.msra.mxu0 %v590_v13 }
 0x21b   :  { %3666 = vmatprep.subr.bf16.mxu1 %v774_v18  ;;  %3698 = vmatprep.subr.bf16.mxu0 %v589_v17 }
 0x21e   :  { %3667 = vmatpush3.bf16.msra.mxu1 %v774_v18  ;;  %3699 = vmatpush3.bf16.msra.mxu0 %v589_v17 }
 0x21f   :  { %3668 = vmatprep.subr.bf16.mxu1 %v773_v20  ;;  %3700 = vmatprep.subr.bf16.mxu0 %v588_v19 }
 0x222   :  { %3669 = vmatpush3.bf16.msra.mxu1 %v773_v20  ;;  %3701 = vmatpush3.bf16.msra.mxu0 %v588_v19 }
 0x223   :  { %3670 = vmatprep.subr.bf16.mxu1 %v772_v22  ;;  %3702 = vmatprep.subr.bf16.mxu0 %v587_v21 }
 0x226   :  { %3671 = vmatpush3.bf16.msra.mxu1 %v772_v22  ;;  %3703 = vmatpush3.bf16.msra.mxu0 %v587_v21 }
 0x227   :  { %3672 = vmatprep.subr.bf16.mxu1 %v771_v25  ;;  %3704 = vmatprep.subr.bf16.mxu0 %v586_v23 }
 0x22a   :  { %3673 = vmatpush3.bf16.msra.mxu1 %v771_v25  ;;  %3705 = vmatpush3.bf16.msra.mxu0 %v586_v23 }
 0x22b   :  { %3674 = vmatprep.subr.bf16.mxu1 %v770_v28  ;;  %3706 = vmatprep.subr.bf16.mxu0 %v585_v26 }
 0x22e   :  { %3675 = vmatpush3.bf16.msra.mxu1 %v770_v28  ;;  %3707 = vmatpush3.bf16.msra.mxu0 %v585_v26 }
 0x22f   :  { %3676 = vmatprep.subr.bf16.mxu1 %v769_v30  ;;  %3708 = vmatprep.subr.bf16.mxu0 %v584_v29 }
 0x232   :  { %3677 = vmatpush3.bf16.msra.mxu1 %v769_v30  ;;  %3709 = vmatpush3.bf16.msra.mxu0 %v584_v29 }
 0x233   :  { %3678 = vmatprep.subr.bf16.mxu1 %v768_v32  ;;  %3710 = vmatprep.subr.bf16.mxu0 %v583_v31 }
 0x236   :  { %3679 = vmatpush3.bf16.msra.mxu1 %v768_v32  ;;  %3711 = vmatpush3.bf16.msra.mxu0 %v583_v31 }
 0x237   :  { %3728 = vmatprep.subr.bf16.mxu1 %v4190_v34 }
 0x239   :  { %3681 = vmatmul.mubr.bf16.vlgmr.msra.gmra.mxu1 %v4580_v35  ;;  %3713 = vmatmul.mubr.bf16.vlgmr.msra.gmra.mxu0 %v4582_v36 }
 0x23a   :  { %3729 = vmatpush3.bf16.msra.mxu1 %v4190_v34  ;;  %3684 = vmatprep.mubr.bf16.mxu1 %v4584_v37 }
 0x23b   :  { %3730 = vmatprep.subr.bf16.mxu1 %v4191_v38  ;;  %3716 = vmatprep.mubr.bf16.mxu0 %v4586_v39 }
 0x23e   :  { %3731 = vmatpush3.bf16.msra.mxu1 %v4191_v38 }
 0x23f   :  { %3732 = vmatprep.subr.bf16.mxu1 %v4196_v43 }
 0x241   :  { %3685 = vmatmul.mubr.bf16.gmra.mxu1 %v4592_v44  ;;  %3717 = vmatmul.mubr.bf16.gmra.mxu0 %v4594_v45 }
 0x242   :  { %3733 = vmatpush3.bf16.msra.mxu1 %v4196_v43  ;;  %3688 = vmatprep.mubr.bf16.mxu1 %v4596_v46 }
 0x243   :  { %3734 = vmatprep.subr.bf16.mxu1 %v4197_v47  ;;  %3720 = vmatprep.mubr.bf16.mxu0 %v4598_v48 }
 0x246   :  { %3735 = vmatpush3.bf16.msra.mxu1 %v4197_v47 }
 0x247   :  { %3736 = vmatprep.subr.bf16.mxu1 %v4202_v49 }
 0x249   :  { %3689 = vmatmul.mubr.bf16.gmra.mxu1 %v4604_v50  ;;  %3721 = vmatmul.mubr.bf16.gmra.mxu0 %v4606_v51 }
 0x24a   :  { %3737 = vmatpush3.bf16.msra.mxu1 %v4202_v49  ;;  %3692 = vmatprep.mubr.bf16.mxu1 %v4608_v53 }
 0x24b   :  { %3738 = vmatprep.subr.bf16.mxu1 %v4203_v54  ;;  %3724 = vmatprep.mubr.bf16.mxu0 %v4610_v56 }
 0x24e   :  { %3739 = vmatpush3.bf16.msra.mxu1 %v4203_v54 }
 0x24f   :  { %3740 = vmatprep.subr.bf16.mxu1 %v4208_v57 }
 0x251   :  { %3693 = vmatmul.mubr.bf16.gmra.mxu1 %v4616_v58  ;;  %3725 = vmatmul.mubr.bf16.gmra.mxu0 %v4618_v59 }
 0x252   :  { %3741 = vmatpush3.bf16.msra.mxu1 %v4208_v57  ;;  %3744 = vmatprep.mubr.bf16.mxu1 %v4513_v52 }
 0x253   :  { %3742 = vmatprep.subr.bf16.mxu1 %v4209_v60  ;;  %3776 = vmatprep.mubr.bf16.mxu0 %v4638_v5 }
 0x256   :  { %3743 = vmatpush3.bf16.msra.mxu1 %v4209_v60 }
 0x257   :  { %3792 = vmatprep.subr.bf16.mxu1 %v4210_v61 }
 0x259   :  { %3745 = vmatmul.mubr.bf16.vlgmr.msra.gmra.mxu1 %v4516_v55 }
 0x25a   :  { %3748 = vmatprep.mubr.bf16.mxu1 %v4525_v6  ;;  %3793 = vmatpush3.bf16.msra.mxu1 %v4210_v61 }
 0x25b   :  { %3794 = vmatprep.subr.bf16.mxu1 %v4211_v62 }
 0x25e   :  { %3795 = vmatpush3.bf16.msra.mxu1 %v4211_v62 }
 0x25f   :  { %3796 = vmatprep.subr.bf16.mxu1 %v4212_v63 }
 0x261   :  { %3749 = vmatmul.mubr.bf16.gmra.mxu1 %v4528_v9 }
 0x262   :  { %3752 = vmatprep.mubr.bf16.mxu1 %v4537_v24  ;;  %3797 = vmatpush3.bf16.msra.mxu1 %v4212_v63 }
 0x263   :  { %3798 = vmatprep.subr.bf16.mxu1 %v4213_v0 }
 0x266   :  { %3799 = vmatpush3.bf16.msra.mxu1 %v4213_v0 }
 0x267   :  { %3800 = vmatprep.subr.bf16.mxu1 %v4214_v1 }
 0x269   :  { %3753 = vmatmul.mubr.bf16.gmra.mxu1 %v4540_v27 }
 0x26a   :  { %3756 = vmatprep.mubr.bf16.mxu1 %v4548_v40  ;;  %3801 = vmatpush3.bf16.msra.mxu1 %v4214_v1 }
 0x26b   :  { %3802 = vmatprep.subr.bf16.mxu1 %v4215_v2 }
 0x26e   :  { %3803 = vmatpush3.bf16.msra.mxu1 %v4215_v2 }
 0x26f   :  { %3804 = vmatprep.subr.bf16.mxu1 %v4216_v3 }
 0x271   :  { %3757 = vmatmul.mubr.bf16.gmra.mxu1 %v4550_v41 }
 0x272   :  { %3805 = vmatpush3.bf16.msra.mxu1 %v4216_v3  ;;  %3808 = vmatprep.mubr.bf16.mxu1 %v4513_v52 }
 0x273   :  { %3806 = vmatprep.subr.bf16.mxu1 %v4217_v4 }
 0x276   :  { %3807 = vmatpush3.bf16.msra.mxu1 %v4217_v4 }
 0x279   :  { %3809 = vmatmul.mubr.bf16.vlgmr.msra.gmra.mxu1 %v4516_v55 }
 0x27a   :  { %3812 = vmatprep.mubr.bf16.mxu1 %v4525_v6 }
 0x281   :  { %3813 = vmatmul.mubr.bf16.gmra.mxu1 %v4528_v9 }
 0x282   :  { %3816 = vmatprep.mubr.bf16.mxu1 %v4537_v24 }
 0x289   :  { %3817 = vmatmul.mubr.bf16.gmra.mxu1 %v4540_v27 }
 0x28a   :  { %3820 = vmatprep.mubr.bf16.mxu1 %v4548_v40 }
 0x291   :  { %3821 = vmatmul.mubr.bf16.gmra.mxu1 %v4550_v41 }
 0x2f9   :  { %v3682_v52 = vpop.f32.mrf.mxu1  ;;  %v3714_v7 = vpop.f32.mrf.mxu0 }
 0x2fa   :  { %v4641_v8 = vadd.f32 %v3714_v7, %v3682_v52 }
 0x2fb   :  { %v858_v55 = vpop.f32.mrf.mxu1  ;;  %v1003_v6 = vpop.f32.mrf.mxu0 }
 0x2fc   :  { %v4643_v10 = vadd.f32 %v1003_v6, %v858_v55 }
 0x2fd   :  { %v4645_v9 = vpop.f32.mrf.mxu1  ;;  %v4647_v24 = vpop.f32.mrf.mxu0 }
 0x2ff   :  { %v4649_v27 = vpop.f32.mrf.mxu1  ;;  %v4651_v40 = vpop.f32.mrf.mxu0 }
 0x301   :  { %v3686_v41 = vpop.f32.mrf.mxu1  ;;  %v3718_v11 = vpop.f32.mrf.mxu0 }
 0x302   :  { %v4653_v12 = vadd.f32 %v3718_v11, %v3686_v41 }
 0x303   :  { %v874_v13 = vpop.f32.mrf.mxu1  ;;  %v1019_v14 = vpop.f32.mrf.mxu0 }
 0x304   :  { %v4655_v15 = vadd.f32 %v1019_v14, %v874_v13 }
 0x305   :  { %v4657_v16 = vpop.f32.mrf.mxu1  ;;  %v4659_v17 = vpop.f32.mrf.mxu0 }
 0x307   :  { %v4661_v18 = vpop.f32.mrf.mxu1  ;;  %v4663_v19 = vpop.f32.mrf.mxu0 }
 0x309   :  { %v3690_v20 = vpop.f32.mrf.mxu1  ;;  %v3722_v21 = vpop.f32.mrf.mxu0 }
 0x30a   :  { %v4665_v22 = vadd.f32 %v3722_v21, %v3690_v20 }
 0x30b   :  { %v890_v23 = vpop.f32.mrf.mxu1  ;;  %v1035_v25 = vpop.f32.mrf.mxu0 }
 0x30c   :  { %v4667_v26 = vadd.f32 %v1035_v25, %v890_v23 }
 0x30d   :  { %v4669_v28 = vpop.f32.mrf.mxu1  ;;  %v4671_v29 = vpop.f32.mrf.mxu0 }
 0x30f   :  { %v4673_v30 = vpop.f32.mrf.mxu1  ;;  %v4675_v31 = vpop.f32.mrf.mxu0 }
 0x311   :  { %v3694_v32 = vpop.f32.mrf.mxu1  ;;  %v3726_v34 = vpop.f32.mrf.mxu0 }
 0x312   :  { %v4677_v38 = vadd.f32 %v3726_v34, %v3694_v32 }
 0x313   :  { %v906_v43 = vpop.f32.mrf.mxu1  ;;  %v1051_v47 = vpop.f32.mrf.mxu0 }
 0x314   :  { %v4679_v49 = vadd.f32 %v1051_v47, %v906_v43 }
 0x315   :  { %v4681_v54 = vpop.f32.mrf.mxu1 }
 0x317   :  { %v4683_v57 = vpop.f32.mrf.mxu1 }
 0x319   :  { %v3746_v60 = vpop.f32.mrf.mxu1 }
 0x31b   :  { %v1164_v61 = vpop.f32.mrf.mxu1 }
 0x31d   :  { %v3747_v62 = vpop.f32.mrf.mxu1 }
 0x31f   :  { %v1167_v63 = vpop.f32.mrf.mxu1 }
 0x321   :  { %v3750_v0 = vpop.f32.mrf.mxu1 }
 0x323   :  { %v1180_v1 = vpop.f32.mrf.mxu1 }
 0x325   :  { %v3751_v2 = vpop.f32.mrf.mxu1 }
 0x327   :  { %v1183_v3 = vpop.f32.mrf.mxu1 }
 0x329   :  { %v3754_v4 = vpop.f32.mrf.mxu1 }
 0x32b   :  { %v1196_v52 = vpop.f32.mrf.mxu1 }
 0x32d   :  { %v3755_v7 = vpop.f32.mrf.mxu1 }
 0x32e   :  { %v1248_v25 = vpack.c.bf16 %v3755_v7, %v3754_v4  ;;  %v1244_v7 = vpack.c.bf16 %v3747_v62, %v3746_v60  ;;  %v4699_v62 = vld [vmem:[#allocation4 + $0x88] ss:$16 sps:$4 sm:$0xff]  }
 0x32f   :  { %v1199_v55 = vpop.f32.mrf.mxu1  ;;  %5113 = vst [vmem:[#allocation25_spill] sm:$0xff] %v4699_v62 }
 0x330   :  { %v1247_v43 = vpack.c.bf16 %v1199_v55, %v1196_v52  ;;  %v1243_v52 = vpack.c.bf16 %v1167_v63, %v1164_v61  ;;  %v4697_v61 = vld [vmem:[#allocation4 + $0x68] ss:$16 sps:$4 sm:$0xff]  }
 0x331   :  { %v3758_v6 = vpop.f32.mrf.mxu1  ;;  %5112 = vst [vmem:[#allocation24_spill] sm:$0xff] %v4697_v61 }
 0x333   :  { %v1212_v41 = vpop.f32.mrf.mxu1 }
 0x335   :  { %v3759_v11 = vpop.f32.mrf.mxu1 }
 0x336   :  { %v1250_v13 = vpack.c.bf16 %v3759_v11, %v3758_v6  ;;  %v1246_v11 = vpack.c.bf16 %v3751_v2, %v3750_v0  ;;  %v4691_v0 = vld [vmem:[#allocation4 + $0x28] ss:$16 sps:$4 sm:$0xff]  }
 0x337   :  { %v1215_v14 = vpop.f32.mrf.mxu1  ;;  %5110 = vst [vmem:[#allocation22_spill] sm:$0xff] %v4691_v0 }
 0x338   :  { %v1249_v20 = vpack.c.bf16 %v1215_v14, %v1212_v41  ;;  %3760 = vmatprep.subr.bf16.mxu0 %v1250_v13  ;;  %v1245_v14 = vpack.c.bf16 %v1183_v3, %v1180_v1 }
 0x339   :  { %3761 = vmatpush3.bf16.msra.mxu0 %v1250_v13  ;;  %v4685_v21 = vpop.f32.mrf.mxu1 }
 0x33a   :  { %3762 = vmatprep.subr.bf16.mxu0 %v1249_v20 }
 0x33b   :  { %v4687_v23 = vpop.f32.mrf.mxu1 }
 0x33d   :  { %3763 = vmatpush3.bf16.msra.mxu0 %v1249_v20  ;;  %v3811_v32 = vpop.f32.mrf.mxu1 }
 0x33e   :  { %3764 = vmatprep.subr.bf16.mxu0 %v1248_v25 }
 0x33f   :  { %v4689_v34 = vpop.f32.mrf.mxu1 }
 0x341   :  { %3765 = vmatpush3.bf16.msra.mxu0 %v1248_v25  ;;  %v3814_v47 = vpop.f32.mrf.mxu1 }
 0x342   :  { %3766 = vmatprep.subr.bf16.mxu0 %v1247_v43 }
 0x343   :  { %v1526_v6 = vpop.f32.mrf.mxu1 }
 0x345   :  { %3767 = vmatpush3.bf16.msra.mxu0 %v1247_v43  ;;  %v3815_v41 = vpop.f32.mrf.mxu1  ;;  %v4693_v43 = vld [vmem:[#allocation4 + $0x48] ss:$16 sps:$4 sm:$0xff]  }
 0x346   :  { %3768 = vmatprep.subr.bf16.mxu0 %v1246_v11  ;;  %5111 = vst [vmem:[#allocation23_spill] sm:$0xff] %v4693_v43 }
 0x347   :  { %v1529_v13 = vpop.f32.mrf.mxu1 }
 0x349   :  { %3769 = vmatpush3.bf16.msra.mxu0 %v1246_v11  ;;  %v3818_v5 = vpop.f32.mrf.mxu1 }
 0x34a   :  { %3770 = vmatprep.subr.bf16.mxu0 %v1245_v14 }
 0x34b   :  { %v1542_v4 = vpop.f32.mrf.mxu1 }
 0x34d   :  { %3771 = vmatpush3.bf16.msra.mxu0 %v1245_v14  ;;  %v3819_v20 = vpop.f32.mrf.mxu1  ;;  %v1592_v14 = vpack.c.bf16 %v3815_v41, %v3814_v47  ;;  %v1589_v47 = vpack.c.bf16 %v4689_v34, %v4687_v23  ;;  %v4720_v41 = vld [vmem:[#allocation4 + $0x4c] ss:$16 sps:$4 sm:$0xff]  }
 0x34e   :  { %3772 = vmatprep.subr.bf16.mxu0 %v1244_v7  ;;  %v1594_v60 = vpack.c.bf16 %v3819_v20, %v3818_v5  ;;  %v1591_v5 = vpack.c.bf16 %v1529_v13, %v1526_v6  ;;  %v4712_v20 = vld [vmem:[#allocation4 + $0xc] ss:$16 sps:$4 sm:$0xff]   ;;  %5119 = vst [vmem:[#allocation31_spill] sm:$0xff] %v4720_v41 }
 0x34f   :  { %v1545_v59 = vpop.f32.mrf.mxu1  ;;  %5117 = vst [vmem:[#allocation29_spill] sm:$0xff] %v4712_v20  ;;  %v4718_v6 = vld [vmem:[#allocation4 + $0x2c] ss:$16 sps:$4 sm:$0xff]  }
 0x350   :  { %v1593_v63 = vpack.c.bf16 %v1545_v59, %v1542_v4  ;;  %v1590_v59 = vpack.c.bf16 %v3811_v32, %v4685_v21  ;;  %v4710_v4 = vld [vmem:[#allocation4 + $0xe8] ss:$16 sps:$4 sm:$0xff]   ;;  %5118 = vst [vmem:[#allocation30_spill] sm:$0xff] %v4718_v6  ;;  %v4724_v21 = vld [vmem:[#allocation4 + $0x6c] ss:$16 sps:$4 sm:$0xff]  }
 0x351   :  { %3773 = vmatpush3.bf16.msra.mxu0 %v1244_v7  ;;  %v3822_v55 = vpop.f32.mrf.mxu1  ;;  %v4703_v7 = vld [vmem:[#allocation4 + $0xa8] ss:$16 sps:$4 sm:$0xff]   ;;  %5116 = vst [vmem:[#allocation28_spill] sm:$0xff] %v4710_v4  ;;  %5120 = vst [vmem:[#allocation32_spill] sm:$0xff] %v4724_v21  ;;  %v4726_v32 = vld [vmem:[#allocation4 + $0x8c] ss:$16 sps:$4 sm:$0xff]  }
 0x352   :  { %3774 = vmatprep.subr.bf16.mxu0 %v1243_v52  ;;  %5114 = vst [vmem:[#allocation26_spill] sm:$0xff] %v4703_v7  ;;  %5121 = vst [vmem:[#allocation33_spill] sm:$0xff] %v4726_v32  ;;  %v4730_v23 = vld [vmem:[#allocation4 + $0xac] ss:$16 sps:$4 sm:$0xff]  }
 0x353   :  { %v1558_v25 = vpop.f32.mrf.mxu1  ;;  %5122 = vst [vmem:[#allocation34_spill] sm:$0xff] %v4730_v23  ;;  %v4732_v34 = vld [vmem:[#allocation4 + $0xcc] ss:$16 sps:$4 sm:$0xff]  }
 0x354   :  { %5123 = vst [vmem:[#allocation35_spill] sm:$0xff] %v4732_v34  ;;  %v4736_v13 = vld [vmem:[#allocation4 + $0xec] ss:$16 sps:$4 sm:$0xff]  }
 0x355   :  { %3775 = vmatpush3.bf16.msra.mxu0 %v1243_v52  ;;  %v3823_v2 = vpop.f32.mrf.mxu1  ;;  %v4705_v52 = vld [vmem:[#allocation4 + $0xc8] ss:$16 sps:$4 sm:$0xff]   ;;  %5124 = vst [vmem:[#allocation36_spill] sm:$0xff] %v4736_v13 }
 0x356   :  { %v1596_v1 = vpack.c.bf16 %v3823_v2, %v3822_v55  ;;  %5115 = vst [vmem:[#allocation27_spill] sm:$0xff] %v4705_v52  ;;  %v4234_v55 = vld [vmem:[#allocation9 + $0xe0] ss:$16 sps:$4 sm:$0xff]  }
 0x357   :  { %v1561_v3 = vpop.f32.mrf.mxu1  ;;  %3856 = vmatprep.subr.bf16.mxu1 %v4234_v55  ;;  %v4236_v2 = vld [vmem:[#allocation9 + $0xc0] ss:$16 sps:$4 sm:$0xff]  }
 0x358   :  { %v1595_v11 = vpack.c.bf16 %v1561_v3, %v1558_v25  ;;  %3777 = vmatmul.mubr.bf16.vlgmr.msra.gmra.mxu0 %v4691_v0  ;;  %3824 = vmatprep.subr.bf16.mxu0 %v1596_v1  ;;  %v4235_v25 = vld [vmem:[#allocation9 + $0xe4] ss:$16 sps:$4 sm:$0xff]   ;;  %v4238_v3 = vld [vmem:[#allocation9 + $0xa0] ss:$16 sps:$4 sm:$0xff]  }
 0x359   :  { %3825 = vmatpush3.bf16.msra.mxu0 %v1596_v1  ;;  %3780 = vmatprep.mubr.bf16.mxu0 %v4693_v43  ;;  %v4237_v1 = vld [vmem:[#allocation9 + $0xc4] ss:$16 sps:$4 sm:$0xff]   ;;  %v4760_v0 = vld [vmem:[%s5077_s5] ss:$0 sm:$0xff] }
 0x35a   :  { %3826 = vmatprep.subr.bf16.mxu0 %v1595_v11  ;;  %3857 = vmatpush3.bf16.msra.mxu1 %v4234_v55  ;;  %v4246_v55 = vld [vmem:[#allocation9 + $0x20] ss:$16 sps:$4 sm:$0xff]  }
 0x35b   :  { %3858 = vmatprep.subr.bf16.mxu1 %v4236_v2 }
 0x35d   :  { %3827 = vmatpush3.bf16.msra.mxu0 %v1595_v11  ;;  %v4239_v11 = vld [vmem:[#allocation9 + $0xa4] ss:$16 sps:$4 sm:$0xff]  }
 0x35e   :  { %3828 = vmatprep.subr.bf16.mxu0 %v1594_v60  ;;  %3859 = vmatpush3.bf16.msra.mxu1 %v4236_v2  ;;  %v4248_v2 = vld [vmem:[#allocation9] ss:$16 sps:$4 sm:$0xff]  }
 0x35f   :  { %3860 = vmatprep.subr.bf16.mxu1 %v4238_v3 }
 0x360   :  { %3781 = vmatmul.mubr.bf16.gmra.mxu0 %v4697_v61 }
 0x361   :  { %3829 = vmatpush3.bf16.msra.mxu0 %v1594_v60  ;;  %3784 = vmatprep.mubr.bf16.mxu0 %v4699_v62  ;;  %v4240_v60 = vld [vmem:[#allocation9 + $0x80] ss:$16 sps:$4 sm:$0xff]  }
 0x362   :  { %3830 = vmatprep.subr.bf16.mxu0 %v1593_v63  ;;  %3861 = vmatpush3.bf16.msra.mxu1 %v4238_v3  ;;  %v4739_v3 = vpop.f32.mrf.mxu0 }
 0x363   :  { %3862 = vmatprep.subr.bf16.mxu1 %v4240_v60 }
 0x365   :  { %3831 = vmatpush3.bf16.msra.mxu0 %v1593_v63  ;;  %v4241_v63 = vld [vmem:[#allocation9 + $0x84] ss:$16 sps:$4 sm:$0xff]  }
 0x366   :  { %3832 = vmatprep.subr.bf16.mxu0 %v1592_v14  ;;  %3863 = vmatpush3.bf16.msra.mxu1 %v4240_v60 }
 0x368   :  { %3785 = vmatmul.mubr.bf16.gmra.mxu0 %v4703_v7  ;;  %v1007_v7 = vadd.f32 %v4651_v40, %v4649_v27 }
 0x369   :  { %3833 = vmatpush3.bf16.msra.mxu0 %v1592_v14  ;;  %3788 = vmatprep.mubr.bf16.mxu0 %v4705_v52  ;;  %v4242_v14 = vld [vmem:[#allocation9 + $0x60] ss:$16 sps:$4 sm:$0xff]  }
 0x36a   :  { %3834 = vmatprep.subr.bf16.mxu0 %v1591_v5  ;;  %3864 = vmatprep.subr.bf16.mxu1 %v4242_v14 }
 0x36b   :  { %3865 = vmatpush3.bf16.msra.mxu1 %v4242_v14 }
 0x36d   :  { %3835 = vmatpush3.bf16.msra.mxu0 %v1591_v5  ;;  %v4243_v5 = vld [vmem:[#allocation9 + $0x64] ss:$16 sps:$4 sm:$0xff]  }
 0x36e   :  { %3836 = vmatprep.subr.bf16.mxu0 %v1590_v59 }
 0x370   :  { %3789 = vmatmul.mubr.bf16.gmra.mxu0 %v4710_v4 }
 0x371   :  { %3837 = vmatpush3.bf16.msra.mxu0 %v1590_v59  ;;  %3840 = vmatprep.mubr.bf16.mxu0 %v4712_v20  ;;  %v4244_v59 = vld [vmem:[#allocation9 + $0x40] ss:$16 sps:$4 sm:$0xff]   ;;  %v1015_v20 = vadd.f32 %v4647_v24, %v4645_v9 }
 0x372   :  { %3838 = vmatprep.subr.bf16.mxu0 %v1589_v47  ;;  %3866 = vmatprep.subr.bf16.mxu1 %v4244_v59 }
 0x373   :  { %3867 = vmatpush3.bf16.msra.mxu1 %v4244_v59 }
 0x374   :  { %3868 = vmatprep.subr.bf16.mxu1 %v4246_v55 }
 0x375   :  { %3839 = vmatpush3.bf16.msra.mxu0 %v1589_v47  ;;  %v4245_v47 = vld [vmem:[#allocation9 + $0x44] ss:$16 sps:$4 sm:$0xff]  }
 0x376   :  { %3888 = vmatprep.subr.bf16.mxu0 %v4235_v25 }
 0x377   :  { %3869 = vmatpush3.bf16.msra.mxu1 %v4246_v55 }
 0x378   :  { %3841 = vmatmul.mubr.bf16.vlgmr.msra.gmra.mxu0 %v4718_v6  ;;  %3870 = vmatprep.subr.bf16.mxu1 %v4248_v2 }
 0x379   :  { %3844 = vmatprep.mubr.bf16.mxu0 %v4720_v41  ;;  %3889 = vmatpush3.bf16.msra.mxu0 %v4235_v25  ;;  %v4247_v25 = vld [vmem:[#allocation9 + $0x24] ss:$16 sps:$4 sm:$0xff]  }
 0x37a   :  { %3890 = vmatprep.subr.bf16.mxu0 %v4237_v1 }
 0x37b   :  { %3871 = vmatpush3.bf16.msra.mxu1 %v4248_v2 }
 0x37d   :  { %3891 = vmatpush3.bf16.msra.mxu0 %v4237_v1  ;;  %v4249_v1 = vld [vmem:[#allocation9 + $0x4] ss:$16 sps:$4 sm:$0xff]  }
 0x37e   :  { %3892 = vmatprep.subr.bf16.mxu0 %v4239_v11 }
 0x380   :  { %3845 = vmatmul.mubr.bf16.gmra.mxu0 %v4724_v21 }
 0x381   :  { %3848 = vmatprep.mubr.bf16.mxu0 %v4726_v32  ;;  %3893 = vmatpush3.bf16.msra.mxu0 %v4239_v11  ;;  %v4741_v11 = vpop.f32.mrf.mxu0 }
 0x382   :  { %3894 = vmatprep.subr.bf16.mxu0 %v4241_v63 }
 0x385   :  { %3895 = vmatpush3.bf16.msra.mxu0 %v4241_v63 }
 0x386   :  { %3896 = vmatprep.subr.bf16.mxu0 %v4243_v5 }
 0x388   :  { %3849 = vmatmul.mubr.bf16.gmra.mxu0 %v4730_v23 }
 0x389   :  { %3852 = vmatprep.mubr.bf16.mxu0 %v4732_v34  ;;  %3897 = vmatpush3.bf16.msra.mxu0 %v4243_v5 }
 0x38a   :  { %3898 = vmatprep.subr.bf16.mxu0 %v4245_v47 }
 0x38d   :  { %3899 = vmatpush3.bf16.msra.mxu0 %v4245_v47 }
 0x38e   :  { %3900 = vmatprep.subr.bf16.mxu0 %v4247_v25 }
 0x390   :  { %3853 = vmatmul.mubr.bf16.gmra.mxu0 %v4736_v13 }
 0x391   :  { %3901 = vmatpush3.bf16.msra.mxu0 %v4247_v25 }
 0x392   :  { %3902 = vmatprep.subr.bf16.mxu0 %v4249_v1 }
 0x395   :  { %3903 = vmatpush3.bf16.msra.mxu0 %v4249_v1 }
 0x418   :  { %v3778_v60 = vpop.f32.mrf.mxu0 }
 0x419   :  { %v1398_v4 = vadd.f32 %v3778_v60, %v4641_v8 }
 0x41a   :  { %v1333_v63 = vpop.f32.mrf.mxu0 }
 0x41b   :  { %v1396_v62 = vadd.f32 %v1333_v63, %v4643_v10  ;;  %v1031_v10 = vadd.f32 %v4659_v17, %v4657_v16 }
 0x41c   :  { %v3779_v14 = vpop.f32.mrf.mxu0 }
 0x41d   :  { %v1399_v61 = vadd.f32 %v3779_v14, %v1015_v20 }
 0x41e   :  { %v1336_v5 = vpop.f32.mrf.mxu0 }
 0x41f   :  { %v1397_v56 = vadd.f32 %v1336_v5, %v1007_v7 }
 0x420   :  { %v3782_v59 = vpop.f32.mrf.mxu0 }
 0x421   :  { %v1402_v40 = vadd.f32 %v3782_v59, %v4653_v12  ;;  %v1039_v59 = vadd.f32 %v4675_v31, %v4673_v30 }
 0x422   :  { %v1349_v47 = vpop.f32.mrf.mxu0 }
 0x424   :  { %v3783_v13 = vpop.f32.mrf.mxu0 }
 0x426   :  { %v1352_v34 = vpop.f32.mrf.mxu0 }
 0x428   :  { %v3786_v55 = vpop.f32.mrf.mxu0 }
 0x42a   :  { %v1365_v25 = vpop.f32.mrf.mxu0 }
 0x42c   :  { %v3787_v23 = vpop.f32.mrf.mxu0 }
 0x42e   :  { %v1368_v32 = vpop.f32.mrf.mxu0 }
 0x430   :  { %v4743_v21 = vpop.f32.mrf.mxu0 }
 0x432   :  { %v4745_v2 = vpop.f32.mrf.mxu0 }
 0x434   :  { %v4747_v1 = vpop.f32.mrf.mxu0 }
 0x436   :  { %v4749_v41 = vpop.f32.mrf.mxu0 }
 0x438   :  { %v3842_v6 = vpop.f32.mrf.mxu0 }
 0x439   :  { %v1744_v43 = vadd.f32 %v3842_v6, %v1398_v4  ;;  %v1047_v6 = vadd.f32 %v4671_v29, %v4669_v28  ;;  %v1405_v29 = vadd.f32 %v1368_v32, %v1039_v59 }
 0x43a   :  { %v1679_v52 = vpop.f32.mrf.mxu0 }
 0x43b   :  { %v1742_v53 = vadd.f32 %v1679_v52, %v1396_v62  ;;  %v1767_v8 = vadd.f32 %v4760_v0, %v1744_v43  ;;  %v1400_v43 = vadd.f32 %v1349_v47, %v4655_v15 }
 0x43c   :  { %v3843_v58 = vpop.f32.mrf.mxu0 }
 0x43d   :  { %v1745_v51 = vadd.f32 %v3843_v58, %v1399_v61  ;;  %v1765_v4 = vadd.f32 %v4760_v0, %v1742_v53  ;;  %v1023_v58 = vadd.f32 %v4663_v19, %v4661_v18 }
 0x43e   :  { %v1682_v9 = vpop.f32.mrf.mxu0 }
 0x43f   :  { %v1768_v24 = vadd.f32 %v4760_v0, %v1745_v51  ;;  %v1743_v60 = vadd.f32 %v1682_v9, %v1397_v56  ;;  %v1403_v51 = vadd.f32 %v3783_v13, %v1031_v10  ;;  %v1401_v17 = vadd.f32 %v1352_v34, %v1023_v58 }
 0x440   :  { %v3846_v27 = vpop.f32.mrf.mxu0  ;;  %v1406_v13 = vadd.f32 %v3786_v55, %v4665_v22  ;;  %v1404_v9 = vadd.f32 %v1365_v25, %v4667_v26  ;;  %v1410_v25 = vadd.f32 %v4743_v21, %v4677_v38 }
 0x441   :  { %v4768_v20 = vpack.c.bf16 %v1768_v24, %v1767_v8  ;;  %v1766_v7 = vadd.f32 %v4760_v0, %v1743_v60  ;;  %v1748_v62 = vadd.f32 %v3846_v27, %v1402_v40  ;;  %v1407_v8 = vadd.f32 %v3787_v23, %v1047_v6 }
 0x442   :  { %v1695_v61 = vpop.f32.mrf.mxu0  ;;  %v1063_v23 = vadd.f32 %v4739_v3, %v4681_v54 }
 0x443   :  { %v4774_v56 = vpack.c.bf16 %v1766_v7, %v1765_v4  ;;  %v1746_v52 = vadd.f32 %v1695_v61, %v1400_v43  ;;  %v1771_v18 = vadd.f32 %v4760_v0, %v1748_v62  ;;  %v1055_v7 = vadd.f32 %v4741_v11, %v4683_v57 }
 0x444   :  { %v3847_v16 = vpop.f32.mrf.mxu0  ;;  %v1408_v61 = vadd.f32 %v4745_v2, %v4679_v49  ;;  %v1411_v43 = vadd.f32 %v4747_v1, %v1063_v23 }
 0x445   :  { %v1749_v12 = vadd.f32 %v3847_v16, %v1403_v51  ;;  %3872 = vmatprep.mubr.bf16.mxu1 %v4774_v56  ;;  %3904 = vmatprep.mubr.bf16.mxu0 %v4774_v56  ;;  %v1769_v63 = vadd.f32 %v4760_v0, %v1746_v52  ;;  %v1409_v38 = vadd.f32 %v4749_v41, %v1055_v7 }
 0x446   :  { %v1698_v53 = vpop.f32.mrf.mxu0  ;;  %3873 = vmatmul.mubr.bf16.vlgmr.msra.gmra.mxu1 %v4768_v20  ;;  %3905 = vmatmul.mubr.bf16.vlgmr.msra.gmra.mxu0 %v4768_v20 }
 0x447   :  { %v1772_v15 = vadd.f32 %v4760_v0, %v1749_v12  ;;  %v1747_v19 = vadd.f32 %v1698_v53, %v1401_v17 }
 0x448   :  { %v3850_v34 = vpop.f32.mrf.mxu0 }
 0x449   :  { %v4786_v14 = vpack.c.bf16 %v1772_v15, %v1771_v18  ;;  %v1770_v5 = vadd.f32 %v4760_v0, %v1747_v19  ;;  %v1752_v60 = vadd.f32 %v3850_v34, %v1406_v13 }
 0x44a   :  { %v1711_v47 = vpop.f32.mrf.mxu0 }
 0x44b   :  { %v4792_v24 = vpack.c.bf16 %v1770_v5, %v1769_v63  ;;  %v1750_v10 = vadd.f32 %v1711_v47, %v1404_v9  ;;  %v1775_v30 = vadd.f32 %v4760_v0, %v1752_v60 }
 0x44c   :  { %v3851_v28 = vpop.f32.mrf.mxu0 }
 0x44d   :  { %v1753_v22 = vadd.f32 %v3851_v28, %v1407_v8  ;;  %3876 = vmatprep.mubr.bf16.mxu1 %v4792_v24  ;;  %3908 = vmatprep.mubr.bf16.mxu0 %v4792_v24  ;;  %v1773_v27 = vadd.f32 %v4760_v0, %v1750_v10 }
 0x44e   :  { %v1714_v55 = vpop.f32.mrf.mxu0  ;;  %3877 = vmatmul.mubr.bf16.gmra.mxu1 %v4786_v14  ;;  %3909 = vmatmul.mubr.bf16.gmra.mxu0 %v4786_v14 }
 0x44f   :  { %v1776_v26 = vadd.f32 %v4760_v0, %v1753_v22  ;;  %v1751_v31 = vadd.f32 %v1714_v55, %v1405_v29 }
 0x450   :  { %v3854_v32 = vpop.f32.mrf.mxu0 }
 0x451   :  { %v4805_v40 = vpack.c.bf16 %v1776_v26, %v1775_v30  ;;  %v1774_v4 = vadd.f32 %v4760_v0, %v1751_v31  ;;  %v1756_v3 = vadd.f32 %v3854_v32, %v1410_v25 }
 0x452   :  { %v1727_v58 = vpop.f32.mrf.mxu0 }
 0x453   :  { %v4813_v54 = vpack.c.bf16 %v1774_v4, %v1773_v27  ;;  %v1754_v21 = vadd.f32 %v1727_v58, %v1408_v61  ;;  %v1779_v49 = vadd.f32 %v4760_v0, %v1756_v3 }
 0x454   :  { %v3855_v51 = vpop.f32.mrf.mxu0 }
 0x455   :  { %v1757_v62 = vadd.f32 %v3855_v51, %v1411_v43  ;;  %3880 = vmatprep.mubr.bf16.mxu1 %v4813_v54  ;;  %3912 = vmatprep.mubr.bf16.mxu0 %v4813_v54  ;;  %v1777_v2 = vadd.f32 %v4760_v0, %v1754_v21 }
 0x456   :  { %v1730_v16 = vpop.f32.mrf.mxu0  ;;  %3881 = vmatmul.mubr.bf16.gmra.mxu1 %v4805_v40  ;;  %3913 = vmatmul.mubr.bf16.gmra.mxu0 %v4805_v40 }
 0x457   :  { %v1780_v57 = vadd.f32 %v4760_v0, %v1757_v62  ;;  %v1755_v11 = vadd.f32 %v1730_v16, %v1409_v38 }
 0x459   :  { %v4823_v1 = vpack.c.bf16 %v1780_v57, %v1779_v49  ;;  %v1778_v41 = vadd.f32 %v4760_v0, %v1755_v11 }
 0x45b   :  { %v4826_v17 = vpack.c.bf16 %v1778_v41, %v1777_v2 }
 0x45d   :  { %3884 = vmatprep.mubr.bf16.mxu1 %v4826_v17  ;;  %3916 = vmatprep.mubr.bf16.mxu0 %v4826_v17 }
 0x45e   :  { %3885 = vmatmul.mubr.bf16.gmra.mxu1 %v4823_v1  ;;  %3917 = vmatmul.mubr.bf16.gmra.mxu0 %v4823_v1 }
 0x45f   :  { %3936 = vmatprep.mubr.bf16.mxu1 %v4556_v33  ;;  %3968 = vmatprep.mubr.bf16.mxu0 %v4558_v42 }
 0x506   :  { %v4834_v52 = vpop.f32.mrf.mxu1  ;;  %v4836_v12 = vpop.f32.mrf.mxu0 }
 0x508   :  { %v4838_v53 = vpop.f32.mrf.mxu1  ;;  %v4840_v0 = vpop.f32.mrf.mxu0 }
 0x50a   :  { %v3875_v18 = vpop.f32.mrf.mxu1  ;;  %v3907_v15 = vpop.f32.mrf.mxu0 }
 0x50b   :  { %v1951_v11 = vpack.c.bf16 %v3875_v18, %v4834_v52  ;;  %v2120_v2 = vpack.c.bf16 %v3907_v15, %v4836_v12  ;;  %v4251_v52 = vld [vmem:[#allocation9 + $0xc8] ss:$16 sps:$4 sm:$0xff]   ;;  %v4259_v15 = vld [vmem:[#allocation9 + $0xcc] ss:$16 sps:$4 sm:$0xff]  }
 0x50c   :  { %v4842_v19 = vpop.f32.mrf.mxu1  ;;  %v4844_v6 = vpop.f32.mrf.mxu0  ;;  %v4252_v12 = vld [vmem:[#allocation9 + $0xa8] ss:$16 sps:$4 sm:$0xff]  }
 0x50d   :  { %v1950_v41 = vpack.c.bf16 %v4842_v19, %v4838_v53  ;;  %v4253_v53 = vld [vmem:[#allocation9 + $0x88] ss:$16 sps:$4 sm:$0xff]   ;;  %v4260_v19 = vld [vmem:[#allocation9 + $0xac] ss:$16 sps:$4 sm:$0xff]  }
 0x50e   :  { %v3878_v34 = vpop.f32.mrf.mxu1  ;;  %v3910_v13 = vpop.f32.mrf.mxu0  ;;  %v5130_v18 = vld [vmem:[#allocation21_spill] sm:$0xff] }
 0x510   :  { %v1903_v63 = vpop.f32.mrf.mxu1  ;;  %v2072_v33 = vpop.f32.mrf.mxu0 }
 0x512   :  { %v3879_v5 = vpop.f32.mrf.mxu1  ;;  %v3911_v42 = vpop.f32.mrf.mxu0 }
 0x513   :  { %v1953_v62 = vpack.c.bf16 %v3879_v5, %v3878_v34  ;;  %v2122_v16 = vpack.c.bf16 %v3911_v42, %v3910_v13  ;;  %v2119_v34 = vpack.c.bf16 %v4844_v6, %v4840_v0  ;;  %v4250_v13 = vld [vmem:[#allocation9 + $0xe8] ss:$16 sps:$4 sm:$0xff]   ;;  %v4261_v6 = vld [vmem:[#allocation9 + $0x8c] ss:$16 sps:$4 sm:$0xff]  }
 0x514   :  { %v1906_v59 = vpop.f32.mrf.mxu1  ;;  %v2075_v47 = vpop.f32.mrf.mxu0  ;;  %v5128_v0 = vld [vmem:[#allocation19_spill] sm:$0xff] }
 0x515   :  { %v1952_v49 = vpack.c.bf16 %v1906_v59, %v1903_v63  ;;  %v2121_v57 = vpack.c.bf16 %v2075_v47, %v2072_v33  ;;  %v4262_v63 = vld [vmem:[#allocation9 + $0x6c] ss:$16 sps:$4 sm:$0xff]  }
 0x516   :  { %v3882_v9 = vpop.f32.mrf.mxu1  ;;  %v3914_v8 = vpop.f32.mrf.mxu0  ;;  %v4263_v33 = vld [vmem:[#allocation9 + $0x4c] ss:$16 sps:$4 sm:$0xff]  }
 0x517   :  { %v4264_v5 = vld [vmem:[#allocation9 + $0x2c] ss:$16 sps:$4 sm:$0xff]  }
 0x518   :  { %v1919_v60 = vpop.f32.mrf.mxu1  ;;  %v2088_v28 = vpop.f32.mrf.mxu0  ;;  %v4265_v42 = vld [vmem:[#allocation9 + $0xc] ss:$16 sps:$4 sm:$0xff]  }
 0x51a   :  { %v3883_v29 = vpop.f32.mrf.mxu1  ;;  %v3915_v10 = vpop.f32.mrf.mxu0 }
 0x51b   :  { %v1955_v3 = vpack.c.bf16 %v3883_v29, %v3882_v9  ;;  %v2124_v51 = vpack.c.bf16 %v3915_v10, %v3914_v8 }
 0x51c   :  { %v1922_v22 = vpop.f32.mrf.mxu1  ;;  %v2091_v55 = vpop.f32.mrf.mxu0 }
 0x51d   :  { %v1954_v38 = vpack.c.bf16 %v1922_v22, %v1919_v60  ;;  %v2123_v21 = vpack.c.bf16 %v2091_v55, %v2088_v28 }
 0x51e   :  { %v3886_v30 = vpop.f32.mrf.mxu1  ;;  %v3918_v26 = vpop.f32.mrf.mxu0 }
 0x520   :  { %v1935_v31 = vpop.f32.mrf.mxu1  ;;  %v2104_v23 = vpop.f32.mrf.mxu0 }
 0x522   :  { %v3887_v32 = vpop.f32.mrf.mxu1  ;;  %v3919_v25 = vpop.f32.mrf.mxu0 }
 0x523   :  { %v1957_v27 = vpack.c.bf16 %v3887_v32, %v3886_v30  ;;  %v2126_v4 = vpack.c.bf16 %v3919_v25, %v3918_v26 }
 0x524   :  { %v1938_v7 = vpop.f32.mrf.mxu1  ;;  %v2107_v58 = vpop.f32.mrf.mxu0 }
 0x525   :  { %v1956_v61 = vpack.c.bf16 %v1938_v7, %v1935_v31  ;;  %v2125_v43 = vpack.c.bf16 %v2107_v58, %v2104_v23  ;;  %3920 = vmatprep.subr.bf16.mxu1 %v2126_v4  ;;  %3952 = vmatprep.subr.bf16.mxu0 %v1957_v27 }
 0x526   :  { %3921 = vmatpush3.bf16.msra.mxu1 %v2126_v4  ;;  %3953 = vmatpush3.bf16.msra.mxu0 %v1957_v27 }
 0x527   :  { %3922 = vmatprep.subr.bf16.mxu1 %v2125_v43  ;;  %3954 = vmatprep.subr.bf16.mxu0 %v1956_v61 }
 0x52a   :  { %3923 = vmatpush3.bf16.msra.mxu1 %v2125_v43  ;;  %3955 = vmatpush3.bf16.msra.mxu0 %v1956_v61 }
 0x52b   :  { %3924 = vmatprep.subr.bf16.mxu1 %v2124_v51  ;;  %3956 = vmatprep.subr.bf16.mxu0 %v1955_v3 }
 0x52e   :  { %3925 = vmatpush3.bf16.msra.mxu1 %v2124_v51  ;;  %3957 = vmatpush3.bf16.msra.mxu0 %v1955_v3 }
 0x52f   :  { %3926 = vmatprep.subr.bf16.mxu1 %v2123_v21  ;;  %3958 = vmatprep.subr.bf16.mxu0 %v1954_v38 }
 0x532   :  { %3927 = vmatpush3.bf16.msra.mxu1 %v2123_v21  ;;  %3959 = vmatpush3.bf16.msra.mxu0 %v1954_v38 }
 0x533   :  { %3928 = vmatprep.subr.bf16.mxu1 %v2122_v16  ;;  %3960 = vmatprep.subr.bf16.mxu0 %v1953_v62 }
 0x536   :  { %3929 = vmatpush3.bf16.msra.mxu1 %v2122_v16  ;;  %3961 = vmatpush3.bf16.msra.mxu0 %v1953_v62 }
 0x537   :  { %3930 = vmatprep.subr.bf16.mxu1 %v2121_v57  ;;  %3962 = vmatprep.subr.bf16.mxu0 %v1952_v49 }
 0x53a   :  { %3931 = vmatpush3.bf16.msra.mxu1 %v2121_v57  ;;  %3963 = vmatpush3.bf16.msra.mxu0 %v1952_v49 }
 0x53b   :  { %3932 = vmatprep.subr.bf16.mxu1 %v2120_v2  ;;  %3964 = vmatprep.subr.bf16.mxu0 %v1951_v11 }
 0x53e   :  { %3933 = vmatpush3.bf16.msra.mxu1 %v2120_v2  ;;  %3965 = vmatpush3.bf16.msra.mxu0 %v1951_v11 }
 0x53f   :  { %3934 = vmatprep.subr.bf16.mxu1 %v2119_v34  ;;  %3966 = vmatprep.subr.bf16.mxu0 %v1950_v41 }
 0x542   :  { %3935 = vmatpush3.bf16.msra.mxu1 %v2119_v34  ;;  %3967 = vmatpush3.bf16.msra.mxu0 %v1950_v41 }
 0x543   :  { %3984 = vmatprep.subr.bf16.mxu1 %v4250_v13 }
 0x545   :  { %3937 = vmatmul.mubr.bf16.vlgmr.msra.gmra.mxu1 %v4580_v35  ;;  %3969 = vmatmul.mubr.bf16.vlgmr.msra.gmra.mxu0 %v4582_v36  ;;  %v4254_v35 = vld [vmem:[#allocation9 + $0x68] ss:$16 sps:$4 sm:$0xff]  }
 0x546   :  { %3985 = vmatpush3.bf16.msra.mxu1 %v4250_v13  ;;  %3940 = vmatprep.mubr.bf16.mxu1 %v4584_v37  ;;  %v4255_v36 = vld [vmem:[#allocation9 + $0x48] ss:$16 sps:$4 sm:$0xff]   ;;  %v5125_v37 = vld [vmem:[#allocation16_spill] sm:$0xff] }
 0x547   :  { %3986 = vmatprep.subr.bf16.mxu1 %v4251_v52  ;;  %3972 = vmatprep.mubr.bf16.mxu0 %v4586_v39  ;;  %v5126_v39 = vld [vmem:[#allocation17_spill] sm:$0xff] }
 0x54a   :  { %3987 = vmatpush3.bf16.msra.mxu1 %v4251_v52 }
 0x54b   :  { %3988 = vmatprep.subr.bf16.mxu1 %v4252_v12 }
 0x54d   :  { %3941 = vmatmul.mubr.bf16.gmra.mxu1 %v4592_v44  ;;  %3973 = vmatmul.mubr.bf16.gmra.mxu0 %v4594_v45  ;;  %v5127_v44 = vld [vmem:[#allocation18_spill] sm:$0xff]  ;;  %v4256_v45 = vld [vmem:[#allocation9 + $0x28] ss:$16 sps:$4 sm:$0xff]  }
 0x54e   :  { %3989 = vmatpush3.bf16.msra.mxu1 %v4252_v12  ;;  %3944 = vmatprep.mubr.bf16.mxu1 %v4596_v46  ;;  %v4257_v46 = vld [vmem:[#allocation9 + $0x8] ss:$16 sps:$4 sm:$0xff]  }
 0x54f   :  { %3990 = vmatprep.subr.bf16.mxu1 %v4253_v53  ;;  %3976 = vmatprep.mubr.bf16.mxu0 %v4598_v48  ;;  %v5129_v48 = vld [vmem:[#allocation20_spill] sm:$0xff] }
 0x552   :  { %3991 = vmatpush3.bf16.msra.mxu1 %v4253_v53 }
 0x553   :  { %3992 = vmatprep.subr.bf16.mxu1 %v4254_v35 }
 0x555   :  { %3945 = vmatmul.mubr.bf16.gmra.mxu1 %v4604_v50  ;;  %3977 = vmatmul.mubr.bf16.gmra.mxu0 %v5125_v37  ;;  %v4258_v50 = vld [vmem:[#allocation9 + $0xec] ss:$16 sps:$4 sm:$0xff]  }
 0x556   :  { %3993 = vmatpush3.bf16.msra.mxu1 %v4254_v35  ;;  %3948 = vmatprep.mubr.bf16.mxu1 %v5126_v39 }
 0x557   :  { %3994 = vmatprep.subr.bf16.mxu1 %v4255_v36  ;;  %3980 = vmatprep.mubr.bf16.mxu0 %v5127_v44 }
 0x55a   :  { %3995 = vmatpush3.bf16.msra.mxu1 %v4255_v36 }
 0x55b   :  { %3996 = vmatprep.subr.bf16.mxu1 %v4256_v45 }
 0x55d   :  { %3949 = vmatmul.mubr.bf16.gmra.mxu1 %v5128_v0  ;;  %3981 = vmatmul.mubr.bf16.gmra.mxu0 %v5129_v48 }
 0x55e   :  { %3997 = vmatpush3.bf16.msra.mxu1 %v4256_v45  ;;  %4000 = vmatprep.mubr.bf16.mxu1 %v4774_v56 }
 0x55f   :  { %3998 = vmatprep.subr.bf16.mxu1 %v4257_v46  ;;  %4032 = vmatprep.mubr.bf16.mxu0 %v5130_v18 }
 0x562   :  { %3999 = vmatpush3.bf16.msra.mxu1 %v4257_v46 }
 0x563   :  { %4048 = vmatprep.subr.bf16.mxu1 %v4258_v50 }
 0x565   :  { %4001 = vmatmul.mubr.bf16.vlgmr.msra.gmra.mxu1 %v4768_v20 }
 0x566   :  { %4004 = vmatprep.mubr.bf16.mxu1 %v4792_v24  ;;  %4049 = vmatpush3.bf16.msra.mxu1 %v4258_v50 }
 0x567   :  { %4050 = vmatprep.subr.bf16.mxu1 %v4259_v15 }
 0x56a   :  { %4051 = vmatpush3.bf16.msra.mxu1 %v4259_v15 }
 0x56b   :  { %4052 = vmatprep.subr.bf16.mxu1 %v4260_v19 }
 0x56d   :  { %4005 = vmatmul.mubr.bf16.gmra.mxu1 %v4786_v14 }
 0x56e   :  { %4008 = vmatprep.mubr.bf16.mxu1 %v4813_v54  ;;  %4053 = vmatpush3.bf16.msra.mxu1 %v4260_v19 }
 0x56f   :  { %4054 = vmatprep.subr.bf16.mxu1 %v4261_v6 }
 0x572   :  { %4055 = vmatpush3.bf16.msra.mxu1 %v4261_v6 }
 0x573   :  { %4056 = vmatprep.subr.bf16.mxu1 %v4262_v63 }
 0x575   :  { %4009 = vmatmul.mubr.bf16.gmra.mxu1 %v4805_v40 }
 0x576   :  { %4012 = vmatprep.mubr.bf16.mxu1 %v4826_v17  ;;  %4057 = vmatpush3.bf16.msra.mxu1 %v4262_v63 }
 0x577   :  { %4058 = vmatprep.subr.bf16.mxu1 %v4263_v33 }
 0x57a   :  { %4059 = vmatpush3.bf16.msra.mxu1 %v4263_v33 }
 0x57b   :  { %4060 = vmatprep.subr.bf16.mxu1 %v4264_v5 }
 0x57d   :  { %4013 = vmatmul.mubr.bf16.gmra.mxu1 %v4823_v1 }
 0x57e   :  { %4061 = vmatpush3.bf16.msra.mxu1 %v4264_v5  ;;  %4064 = vmatprep.mubr.bf16.mxu1 %v4774_v56 }
 0x57f   :  { %4062 = vmatprep.subr.bf16.mxu1 %v4265_v42 }
 0x582   :  { %4063 = vmatpush3.bf16.msra.mxu1 %v4265_v42 }
 0x585   :  { %4065 = vmatmul.mubr.bf16.vlgmr.msra.gmra.mxu1 %v4768_v20 }
 0x586   :  { %4068 = vmatprep.mubr.bf16.mxu1 %v4792_v24 }
 0x58d   :  { %4069 = vmatmul.mubr.bf16.gmra.mxu1 %v4786_v14 }
 0x58e   :  { %4072 = vmatprep.mubr.bf16.mxu1 %v4813_v54 }
 0x595   :  { %4073 = vmatmul.mubr.bf16.gmra.mxu1 %v4805_v40 }
 0x596   :  { %4076 = vmatprep.mubr.bf16.mxu1 %v4826_v17 }
 0x59d   :  { %4077 = vmatmul.mubr.bf16.gmra.mxu1 %v4823_v1 }
 0x605   :  { %v3938_v59 = vpop.f32.mrf.mxu1  ;;  %v3970_v47 = vpop.f32.mrf.mxu0 }
 0x606   :  { %v4883_v9 = vadd.f32 %v3970_v47, %v3938_v59 }
 0x607   :  { %v2161_v56 = vpop.f32.mrf.mxu1  ;;  %v2258_v8 = vpop.f32.mrf.mxu0 }
 0x608   :  { %v4885_v60 = vadd.f32 %v2258_v8, %v2161_v56 }
 0x609   :  { %v4887_v20 = vpop.f32.mrf.mxu1  ;;  %v4889_v24 = vpop.f32.mrf.mxu0 }
 0x60b   :  { %v4891_v14 = vpop.f32.mrf.mxu1  ;;  %v4893_v54 = vpop.f32.mrf.mxu0 }
 0x60d   :  { %v3942_v40 = vpop.f32.mrf.mxu1  ;;  %v3974_v17 = vpop.f32.mrf.mxu0 }
 0x60e   :  { %v4895_v28 = vadd.f32 %v3974_v17, %v3942_v40 }
 0x60f   :  { %v2177_v1 = vpop.f32.mrf.mxu1  ;;  %v2274_v29 = vpop.f32.mrf.mxu0 }
 0x610   :  { %v4897_v10 = vadd.f32 %v2274_v29, %v2177_v1 }
 0x611   :  { %v4899_v22 = vpop.f32.mrf.mxu1  ;;  %v4901_v55 = vpop.f32.mrf.mxu0 }
 0x613   :  { %v4903_v30 = vpop.f32.mrf.mxu1  ;;  %v4905_v26 = vpop.f32.mrf.mxu0 }
 0x615   :  { %v3946_v31 = vpop.f32.mrf.mxu1  ;;  %v3978_v23 = vpop.f32.mrf.mxu0 }
 0x616   :  { %v4907_v32 = vadd.f32 %v3978_v23, %v3946_v31 }
 0x617   :  { %v2193_v25 = vpop.f32.mrf.mxu1  ;;  %v2290_v27 = vpop.f32.mrf.mxu0 }
 0x618   :  { %v4909_v4 = vadd.f32 %v2290_v27, %v2193_v25 }
 0x619   :  { %v4911_v7 = vpop.f32.mrf.mxu1  ;;  %v4913_v58 = vpop.f32.mrf.mxu0 }
 0x61b   :  { %v4915_v61 = vpop.f32.mrf.mxu1  ;;  %v4917_v43 = vpop.f32.mrf.mxu0 }
 0x61d   :  { %v3950_v3 = vpop.f32.mrf.mxu1  ;;  %v3982_v51 = vpop.f32.mrf.mxu0 }
 0x61e   :  { %v4919_v38 = vadd.f32 %v3982_v51, %v3950_v3 }
 0x61f   :  { %v2209_v21 = vpop.f32.mrf.mxu1  ;;  %v2306_v62 = vpop.f32.mrf.mxu0 }
 0x620   :  { %v4921_v16 = vadd.f32 %v2306_v62, %v2209_v21 }
 0x621   :  { %v4923_v49 = vpop.f32.mrf.mxu1 }
 0x623   :  { %v4925_v57 = vpop.f32.mrf.mxu1 }
 0x625   :  { %v4002_v11 = vpop.f32.mrf.mxu1 }
 0x627   :  { %v2419_v2 = vpop.f32.mrf.mxu1 }
 0x629   :  { %v4003_v41 = vpop.f32.mrf.mxu1 }
 0x62a   :  { %v2483_v1 = vpack.c.bf16 %v4003_v41, %v4002_v11  ;;  %v5133_v41 = vld [vmem:[#allocation24_spill] sm:$0xff] }
 0x62b   :  { %v2422_v34 = vpop.f32.mrf.mxu1 }
 0x62c   :  { %v2482_v23 = vpack.c.bf16 %v2422_v34, %v2419_v2  ;;  %v5134_v34 = vld [vmem:[#allocation25_spill] sm:$0xff] }
 0x62d   :  { %v4006_v13 = vpop.f32.mrf.mxu1 }
 0x62f   :  { %v2435_v52 = vpop.f32.mrf.mxu1 }
 0x631   :  { %v4007_v12 = vpop.f32.mrf.mxu1 }
 0x632   :  { %v2485_v59 = vpack.c.bf16 %v4007_v12, %v4006_v13  ;;  %v5131_v13 = vld [vmem:[#allocation22_spill] sm:$0xff] }
 0x633   :  { %v2438_v53 = vpop.f32.mrf.mxu1 }
 0x634   :  { %v2484_v8 = vpack.c.bf16 %v2438_v53, %v2435_v52  ;;  %v5132_v52 = vld [vmem:[#allocation23_spill] sm:$0xff] }
 0x635   :  { %v4010_v35 = vpop.f32.mrf.mxu1 }
 0x637   :  { %v2451_v36 = vpop.f32.mrf.mxu1 }
 0x639   :  { %v4011_v37 = vpop.f32.mrf.mxu1 }
 0x63a   :  { %v2487_v19 = vpack.c.bf16 %v4011_v37, %v4010_v35  ;;  %v5135_v35 = vld [vmem:[#allocation26_spill] sm:$0xff] }
 0x63b   :  { %v2454_v39 = vpop.f32.mrf.mxu1 }
 0x63c   :  { %v2486_v33 = vpack.c.bf16 %v2454_v39, %v2451_v36  ;;  %v5136_v36 = vld [vmem:[#allocation27_spill] sm:$0xff] }
 0x63d   :  { %v4014_v44 = vpop.f32.mrf.mxu1 }
 0x63f   :  { %v2467_v45 = vpop.f32.mrf.mxu1 }
 0x641   :  { %v4015_v46 = vpop.f32.mrf.mxu1 }
 0x642   :  { %v2489_v0 = vpack.c.bf16 %v4015_v46, %v4014_v44  ;;  %v5137_v44 = vld [vmem:[#allocation28_spill] sm:$0xff]  ;;  %v5139_v46 = vld [vmem:[#allocation30_spill] sm:$0xff] }
 0x643   :  { %v2470_v48 = vpop.f32.mrf.mxu1 }
 0x644   :  { %v2488_v50 = vpack.c.bf16 %v2470_v48, %v2467_v45  ;;  %4016 = vmatprep.subr.bf16.mxu0 %v2489_v0  ;;  %v5138_v45 = vld [vmem:[#allocation29_spill] sm:$0xff]  ;;  %v5141_v48 = vld [vmem:[#allocation32_spill] sm:$0xff] }
 0x645   :  { %4017 = vmatpush3.bf16.msra.mxu0 %v2489_v0  ;;  %v4066_v18 = vpop.f32.mrf.mxu1  ;;  %v5140_v0 = vld [vmem:[#allocation31_spill] sm:$0xff] }
 0x646   :  { %4018 = vmatprep.subr.bf16.mxu0 %v2488_v50 }
 0x647   :  { %v2701_v15 = vpop.f32.mrf.mxu1 }
 0x649   :  { %4019 = vmatpush3.bf16.msra.mxu0 %v2488_v50  ;;  %v4067_v6 = vpop.f32.mrf.mxu1  ;;  %v5142_v50 = vld [vmem:[#allocation33_spill] sm:$0xff] }
 0x64a   :  { %4020 = vmatprep.subr.bf16.mxu0 %v2487_v19  ;;  %v2765_v37 = vpack.c.bf16 %v4067_v6, %v4066_v18  ;;  %v5144_v18 = vld [vmem:[#allocation35_spill] sm:$0xff] }
 0x64b   :  { %v2704_v63 = vpop.f32.mrf.mxu1  ;;  %v4266_v6 = vld [vmem:[#allocation10 + $0x38] sm:$0xff]  }
 0x64c   :  { %v2764_v39 = vpack.c.bf16 %v2704_v63, %v2701_v15  ;;  %v5145_v15 = vld [vmem:[#allocation36_spill] sm:$0xff]  ;;  %4112 = vmatprep.subr.bf16.mxu1 %v4266_v6  ;;  %v4267_v63 = vld [vmem:[#allocation10 + $0x30] sm:$0xff]  }
 0x64d   :  { %4021 = vmatpush3.bf16.msra.mxu0 %v2487_v19  ;;  %v4070_v5 = vpop.f32.mrf.mxu1  ;;  %v5143_v19 = vld [vmem:[#allocation34_spill] sm:$0xff]  ;;  %4113 = vmatpush3.bf16.msra.mxu1 %v4266_v6 }
 0x64e   :  { %4022 = vmatprep.subr.bf16.mxu0 %v2486_v33  ;;  %4114 = vmatprep.subr.bf16.mxu1 %v4267_v63 }
 0x64f   :  { %v2717_v42 = vpop.f32.mrf.mxu1 }
 0x651   :  { %4023 = vmatpush3.bf16.msra.mxu0 %v2486_v33  ;;  %v4071_v47 = vpop.f32.mrf.mxu1  ;;  %4115 = vmatpush3.bf16.msra.mxu1 %v4267_v63  ;;  %v4268_v33 = vld [vmem:[#allocation10 + $0x28] sm:$0xff]   ;;  %v2278_v63 = vadd.f32 %v4905_v26, %v4903_v30  ;;  %v2302_v30 = vadd.f32 %v4913_v58, %v4911_v7 }
 0x652   :  { %4024 = vmatprep.subr.bf16.mxu0 %v2485_v59  ;;  %v2767_v12 = vpack.c.bf16 %v4071_v47, %v4070_v5  ;;  %4116 = vmatprep.subr.bf16.mxu1 %v4268_v33  ;;  %v4269_v5 = vld [vmem:[#allocation10 + $0x20] sm:$0xff]   ;;  %v4272_v47 = vld [vmem:[#allocation10 + $0x8] sm:$0xff]  }
 0x653   :  { %v2720_v56 = vpop.f32.mrf.mxu1 }
 0x654   :  { %v2766_v53 = vpack.c.bf16 %v2720_v56, %v2717_v42  ;;  %v4270_v42 = vld [vmem:[#allocation10 + $0x18] sm:$0xff]   ;;  %v4273_v56 = vld [vmem:[#allocation10] sm:$0xff]  }
 0x655   :  { %4025 = vmatpush3.bf16.msra.mxu0 %v2485_v59  ;;  %v4074_v40 = vpop.f32.mrf.mxu1  ;;  %4117 = vmatpush3.bf16.msra.mxu1 %v4268_v33  ;;  %v4271_v59 = vld [vmem:[#allocation10 + $0x10] sm:$0xff]  }
 0x656   :  { %4026 = vmatprep.subr.bf16.mxu0 %v2484_v8  ;;  %4118 = vmatprep.subr.bf16.mxu1 %v4269_v5 }
 0x657   :  { %v2733_v17 = vpop.f32.mrf.mxu1 }
 0x659   :  { %4027 = vmatpush3.bf16.msra.mxu0 %v2484_v8  ;;  %v4075_v29 = vpop.f32.mrf.mxu1  ;;  %4119 = vmatpush3.bf16.msra.mxu1 %v4269_v5  ;;  %v4942_v8 = vpop.f32.mrf.mxu0 }
 0x65a   :  { %4028 = vmatprep.subr.bf16.mxu0 %v2483_v1  ;;  %v2769_v11 = vpack.c.bf16 %v4075_v29, %v4074_v40  ;;  %4120 = vmatprep.subr.bf16.mxu1 %v4270_v42 }
 0x65b   :  { %v2736_v31 = vpop.f32.mrf.mxu1  ;;  %v4944_v40 = vpop.f32.mrf.mxu0 }
 0x65c   :  { %v2768_v2 = vpack.c.bf16 %v2736_v31, %v2733_v17 }
 0x65d   :  { %4029 = vmatpush3.bf16.msra.mxu0 %v2483_v1  ;;  %v4078_v25 = vpop.f32.mrf.mxu1  ;;  %4121 = vmatpush3.bf16.msra.mxu1 %v4270_v42 }
 0x65e   :  { %4030 = vmatprep.subr.bf16.mxu0 %v2482_v23  ;;  %4122 = vmatprep.subr.bf16.mxu1 %v4271_v59 }
 0x65f   :  { %v2749_v27 = vpop.f32.mrf.mxu1 }
 0x661   :  { %4031 = vmatpush3.bf16.msra.mxu0 %v2482_v23  ;;  %v4079_v3 = vpop.f32.mrf.mxu1  ;;  %4123 = vmatpush3.bf16.msra.mxu1 %v4271_v59 }
 0x662   :  { %v2771_v51 = vpack.c.bf16 %v4079_v3, %v4078_v25  ;;  %4124 = vmatprep.subr.bf16.mxu1 %v4272_v47 }
 0x663   :  { %v2752_v21 = vpop.f32.mrf.mxu1 }
 0x664   :  { %v2770_v62 = vpack.c.bf16 %v2752_v21, %v2749_v27  ;;  %4033 = vmatmul.mubr.bf16.vlgmr.msra.gmra.mxu0 %v5131_v13  ;;  %4080 = vmatprep.subr.bf16.mxu0 %v2771_v51 }
 0x665   :  { %4081 = vmatpush3.bf16.msra.mxu0 %v2771_v51  ;;  %4036 = vmatprep.mubr.bf16.mxu0 %v5132_v52 }
 0x666   :  { %4082 = vmatprep.subr.bf16.mxu0 %v2770_v62  ;;  %4125 = vmatpush3.bf16.msra.mxu1 %v4272_v47 }
 0x667   :  { %4126 = vmatprep.subr.bf16.mxu1 %v4273_v56 }
 0x669   :  { %4083 = vmatpush3.bf16.msra.mxu0 %v2770_v62 }
 0x66a   :  { %4084 = vmatprep.subr.bf16.mxu0 %v2769_v11  ;;  %4127 = vmatpush3.bf16.msra.mxu1 %v4273_v56 }
 0x66c   :  { %4037 = vmatmul.mubr.bf16.gmra.mxu0 %v5133_v41 }
 0x66d   :  { %4085 = vmatpush3.bf16.msra.mxu0 %v2769_v11  ;;  %4040 = vmatprep.mubr.bf16.mxu0 %v5134_v34 }
 0x66e   :  { %4086 = vmatprep.subr.bf16.mxu0 %v2768_v2 }
 0x671   :  { %4087 = vmatpush3.bf16.msra.mxu0 %v2768_v2 }
 0x672   :  { %4088 = vmatprep.subr.bf16.mxu0 %v2767_v12 }
 0x674   :  { %4041 = vmatmul.mubr.bf16.gmra.mxu0 %v5135_v35 }
 0x675   :  { %4089 = vmatpush3.bf16.msra.mxu0 %v2767_v12  ;;  %4044 = vmatprep.mubr.bf16.mxu0 %v5136_v36  ;;  %v2270_v12 = vadd.f32 %v4889_v24, %v4887_v20  ;;  %v2262_v36 = vadd.f32 %v4893_v54, %v4891_v14 }
 0x676   :  { %4090 = vmatprep.subr.bf16.mxu0 %v2766_v53 }
 0x679   :  { %4091 = vmatpush3.bf16.msra.mxu0 %v2766_v53 }
 0x67a   :  { %4092 = vmatprep.subr.bf16.mxu0 %v2765_v37 }
 0x67c   :  { %4045 = vmatmul.mubr.bf16.gmra.mxu0 %v5137_v44 }
 0x67d   :  { %4093 = vmatpush3.bf16.msra.mxu0 %v2765_v37  ;;  %4096 = vmatprep.mubr.bf16.mxu0 %v5138_v45  ;;  %v4963_v45 = vld [vmem:[%s5079_s7] ss:$0 sm:$0xff] }
 0x67e   :  { %4094 = vmatprep.subr.bf16.mxu0 %v2764_v39 }
 0x681   :  { %4095 = vmatpush3.bf16.msra.mxu0 %v2764_v39 }
 0x684   :  { %4097 = vmatmul.mubr.bf16.vlgmr.msra.gmra.mxu0 %v5139_v46 }
 0x685   :  { %4100 = vmatprep.mubr.bf16.mxu0 %v5140_v0 }
 0x68c   :  { %4101 = vmatmul.mubr.bf16.gmra.mxu0 %v5141_v48 }
 0x68d   :  { %4104 = vmatprep.mubr.bf16.mxu0 %v5142_v50 }
 0x694   :  { %4105 = vmatmul.mubr.bf16.gmra.mxu0 %v5143_v19 }
 0x695   :  { %4108 = vmatprep.mubr.bf16.mxu0 %v5144_v18 }
 0x69c   :  { %4109 = vmatmul.mubr.bf16.gmra.mxu0 %v5145_v15 }
 0x724   :  { %v4034_v17 = vpop.f32.mrf.mxu0 }
 0x725   :  { %v2589_v53 = vadd.f32 %v4034_v17, %v4883_v9 }
 0x726   :  { %v2524_v1 = vpop.f32.mrf.mxu0 }
 0x727   :  { %v2587_v37 = vadd.f32 %v2524_v1, %v4885_v60  ;;  %v2286_v60 = vadd.f32 %v4901_v55, %v4899_v22 }
 0x728   :  { %v4035_v29 = vpop.f32.mrf.mxu0 }
 0x729   :  { %v2590_v39 = vadd.f32 %v4035_v29, %v2270_v12 }
 0x72a   :  { %v2527_v31 = vpop.f32.mrf.mxu0 }
 0x72b   :  { %v2588_v0 = vadd.f32 %v2527_v31, %v2262_v36 }
 0x72c   :  { %v4038_v23 = vpop.f32.mrf.mxu0 }
 0x72d   :  { %v2593_v54 = vadd.f32 %v4038_v23, %v4895_v28 }
 0x72e   :  { %v2540_v25 = vpop.f32.mrf.mxu0 }
 0x72f   :  { %v2591_v5 = vadd.f32 %v2540_v25, %v4897_v10 }
 0x730   :  { %v4039_v27 = vpop.f32.mrf.mxu0 }
 0x731   :  { %v2594_v42 = vadd.f32 %v4039_v27, %v2286_v60 }
 0x732   :  { %v2543_v3 = vpop.f32.mrf.mxu0 }
 0x733   :  { %v2592_v17 = vadd.f32 %v2543_v3, %v2278_v63  ;;  %v2294_v3 = vadd.f32 %v4917_v43, %v4915_v61  ;;  %v2318_v61 = vadd.f32 %v4942_v8, %v4923_v49 }
 0x734   :  { %v4042_v51 = vpop.f32.mrf.mxu0 }
 0x735   :  { %v2597_v10 = vadd.f32 %v4042_v51, %v4907_v32 }
 0x736   :  { %v2556_v21 = vpop.f32.mrf.mxu0 }
 0x737   :  { %v2595_v12 = vadd.f32 %v2556_v21, %v4909_v4 }
 0x738   :  { %v4043_v62 = vpop.f32.mrf.mxu0 }
 0x73a   :  { %v2559_v13 = vpop.f32.mrf.mxu0 }
 0x73c   :  { %v4946_v52 = vpop.f32.mrf.mxu0 }
 0x73d   :  { %v2601_v4 = vadd.f32 %v4946_v52, %v4919_v38 }
 0x73e   :  { %v4948_v11 = vpop.f32.mrf.mxu0 }
 0x740   :  { %v4950_v2 = vpop.f32.mrf.mxu0 }
 0x742   :  { %v4952_v41 = vpop.f32.mrf.mxu0 }
 0x744   :  { %v4098_v34 = vpop.f32.mrf.mxu0 }
 0x745   :  { %v2871_v44 = vadd.f32 %v4098_v34, %v2589_v53  ;;  %v2598_v53 = vadd.f32 %v4043_v62, %v2302_v30 }
 0x746   :  { %v2806_v35 = vpop.f32.mrf.mxu0 }
 0x747   :  { %v2869_v48 = vadd.f32 %v2806_v35, %v2587_v37  ;;  %v2894_v9 = vadd.f32 %v4963_v45, %v2871_v44 }
 0x748   :  { %v4099_v46 = vpop.f32.mrf.mxu0 }
 0x749   :  { %v2872_v50 = vadd.f32 %v4099_v46, %v2590_v39  ;;  %v2892_v18 = vadd.f32 %v4963_v45, %v2869_v48  ;;  %v2596_v39 = vadd.f32 %v2559_v13, %v2294_v3 }
 0x74a   :  { %v2809_v20 = vpop.f32.mrf.mxu0 }
 0x74b   :  { %v2895_v24 = vadd.f32 %v4963_v45, %v2872_v50  ;;  %v2870_v19 = vadd.f32 %v2809_v20, %v2588_v0  ;;  %v2310_v0 = vadd.f32 %v4944_v40, %v4925_v57  ;;  %v2599_v50 = vadd.f32 %v4948_v11, %v4921_v16 }
 0x74c   :  { %v4102_v14 = vpop.f32.mrf.mxu0  ;;  %v2602_v20 = vadd.f32 %v4950_v2, %v2318_v61 }
 0x74d   :  { %v2909_v15 = vpack.c.bf16 %v2895_v24, %v2894_v9  ;;  %v2893_v6 = vadd.f32 %v4963_v45, %v2870_v19  ;;  %v2875_v59 = vadd.f32 %v4102_v14, %v2593_v54  ;;  %v2600_v24 = vadd.f32 %v4952_v41, %v2310_v0  ;;  %v5006_v41 = vld [vmem:[%s5081_s9] ss:$0 sm:$0xff] }
 0x74e   :  { %v2822_v33 = vpop.f32.mrf.mxu0 }
 0x74f   :  { %v2908_v47 = vpack.c.bf16 %v2893_v6, %v2892_v18  ;;  %v2873_v22 = vadd.f32 %v2822_v33, %v2591_v5  ;;  %v2898_v1 = vadd.f32 %v4963_v45, %v2875_v59 }
 0x750   :  { %v4103_v56 = vpop.f32.mrf.mxu0 }
 0x751   :  { %v2876_v55 = vadd.f32 %v4103_v56, %v2594_v42  ;;  %4128 = vmatprep.mubr.bf16.mxu1 %v2908_v47  ;;  %v2896_v23 = vadd.f32 %v4963_v45, %v2873_v22 }
 0x752   :  { %v2825_v28 = vpop.f32.mrf.mxu0  ;;  %4129 = vmatmul.mubr.bf16.vlgmr.msra.gmra.mxu1 %v2909_v15 }
 0x753   :  { %v2899_v29 = vadd.f32 %v4963_v45, %v2876_v55  ;;  %v2874_v31 = vadd.f32 %v2825_v28, %v2592_v17 }
 0x754   :  { %v4106_v26 = vpop.f32.mrf.mxu0 }
 0x755   :  { %v2911_v25 = vpack.c.bf16 %v2899_v29, %v2898_v1  ;;  %v2897_v27 = vadd.f32 %v4963_v45, %v2874_v31  ;;  %v2879_v35 = vadd.f32 %v4106_v26, %v2597_v10 }
 0x756   :  { %v2838_v34 = vpop.f32.mrf.mxu0 }
 0x757   :  { %v2910_v36 = vpack.c.bf16 %v2897_v27, %v2896_v23  ;;  %v2877_v7 = vadd.f32 %v2838_v34, %v2595_v12  ;;  %v2902_v51 = vadd.f32 %v4963_v45, %v2879_v35 }
 0x758   :  { %v4107_v37 = vpop.f32.mrf.mxu0 }
 0x759   :  { %v2880_v58 = vadd.f32 %v4107_v37, %v2598_v53  ;;  %4132 = vmatprep.mubr.bf16.mxu1 %v2910_v36  ;;  %v2900_v21 = vadd.f32 %v4963_v45, %v2877_v7 }
 0x75a   :  { %v2841_v32 = vpop.f32.mrf.mxu0  ;;  %4133 = vmatmul.mubr.bf16.gmra.mxu1 %v2911_v25 }
 0x75b   :  { %v2903_v44 = vadd.f32 %v4963_v45, %v2880_v58  ;;  %v2878_v46 = vadd.f32 %v2841_v32, %v2596_v39 }
 0x75c   :  { %v4110_v43 = vpop.f32.mrf.mxu0 }
 0x75d   :  { %v2913_v62 = vpack.c.bf16 %v2903_v44, %v2902_v51  ;;  %v2901_v13 = vadd.f32 %v4963_v45, %v2878_v46  ;;  %v2883_v9 = vadd.f32 %v4110_v43, %v2601_v4 }
 0x75e   :  { %v2854_v48 = vpop.f32.mrf.mxu0 }
 0x75f   :  { %v2912_v49 = vpack.c.bf16 %v2901_v13, %v2900_v21  ;;  %v2881_v38 = vadd.f32 %v2854_v48, %v2599_v50  ;;  %v2906_v60 = vadd.f32 %v4963_v45, %v2883_v9 }
 0x760   :  { %v4111_v8 = vpop.f32.mrf.mxu0 }
 0x761   :  { %v2884_v52 = vadd.f32 %v4111_v8, %v2602_v20  ;;  %4136 = vmatprep.mubr.bf16.mxu1 %v2912_v49  ;;  %v2904_v14 = vadd.f32 %v4963_v45, %v2881_v38 }
 0x762   :  { %v2857_v19 = vpop.f32.mrf.mxu0  ;;  %4137 = vmatmul.mubr.bf16.gmra.mxu1 %v2913_v62 }
 0x763   :  { %v2907_v57 = vadd.f32 %v4963_v45, %v2884_v52  ;;  %v2882_v40 = vadd.f32 %v2857_v19, %v2600_v24 }
 0x765   :  { %v2915_v16 = vpack.c.bf16 %v2907_v57, %v2906_v60  ;;  %v2905_v11 = vadd.f32 %v4963_v45, %v2882_v40 }
 0x767   :  { %v2914_v2 = vpack.c.bf16 %v2905_v11, %v2904_v14 }
 0x769   :  { %4140 = vmatprep.mubr.bf16.mxu1 %v2914_v2 }
 0x76a   :  { %4141 = vmatmul.mubr.bf16.gmra.mxu1 %v2915_v16 }
 0x812   :  { %v4130_v54 = vpop.f32.mrf.mxu1 }
 0x813   :  { %v3030_v18 = vadd.f32 %v4130_v54, %v5006_v41 }
 0x814   :  { %v3021_v15 = vpop.f32.mrf.mxu1 }
 0x815   :  { %vm3086_vm0 = vcmp.ge.f32.partialorder %v3030_v18, 0.0  ;;  %v3102_v6 = vmul.f32 0.01, %v3030_v18  ;;  %v3022_v63 = vadd.f32 %v5006_v41, %v3021_v15 }
 0x816   :  { %v4131_v33 = vpop.f32.mrf.mxu1 }
 0x817   :  { %v3118_v5 = vsel %vm3086_vm0, %v3030_v18, %v3102_v6  ;;  %vm3084_vm1 = vcmp.ge.f32.partialorder %v3022_v63, 0.0  ;;  %v3100_v45 = vmul.f32 0.01, %v3022_v63  ;;  %v3033_v42 = vadd.f32 %v4131_v33, %v5006_v41 }
 0x818   :  { %3134 = vst [vmem:[%s5082_s10 + $0x10] sm:$0xff] %v3118_v5  ;;  %v3024_v59 = vpop.f32.mrf.mxu1 }
 0x819   :  { %v3116_v47 = vsel %vm3084_vm1, %v3022_v63, %v3100_v45  ;;  %vm3087_vm2 = vcmp.ge.f32.partialorder %v3033_v42, 0.0  ;;  %v3103_v56 = vmul.f32 0.01, %v3033_v42  ;;  %v3025_v17 = vadd.f32 %v5006_v41, %v3024_v59 }
 0x81a   :  { %3132 = vst [vmem:[%s5082_s10] sm:$0xff] %v3116_v47  ;;  %v4134_v22 = vpop.f32.mrf.mxu1 }
 0x81b   :  { %v3119_v55 = vsel %vm3087_vm2, %v3033_v42, %v3103_v56  ;;  %vm3085_vm3 = vcmp.ge.f32.partialorder %v3025_v17, 0.0  ;;  %v3101_v28 = vmul.f32 0.01, %v3025_v17  ;;  %v3046_v1 = vadd.f32 %v4134_v22, %v5006_v41 }
 0x81c   :  { %3135 = vst [vmem:[%s5082_s10 + $0x18] sm:$0xff] %v3119_v55  ;;  %v3037_v29 = vpop.f32.mrf.mxu1 }
 0x81d   :  { %v3117_v31 = vsel %vm3085_vm3, %v3025_v17, %v3101_v28  ;;  %vm3090_vm4 = vcmp.ge.f32.partialorder %v3046_v1, 0.0  ;;  %v3106_v30 = vmul.f32 0.01, %v3046_v1  ;;  %v3038_v26 = vadd.f32 %v5006_v41, %v3037_v29 }
 0x81e   :  { %3133 = vst [vmem:[%s5082_s10 + $0x8] sm:$0xff] %v3117_v31  ;;  %v4135_v10 = vpop.f32.mrf.mxu1 }
 0x81f   :  { %v3122_v23 = vsel %vm3090_vm4, %v3046_v1, %v3106_v30  ;;  %vm3088_vm5 = vcmp.ge.f32.partialorder %v3038_v26, 0.0  ;;  %v3104_v25 = vmul.f32 0.01, %v3038_v26  ;;  %v3049_v27 = vadd.f32 %v4135_v10, %v5006_v41 }
 0x820   :  { %3138 = vst [vmem:[%s5082_s10 + $0x30] sm:$0xff] %v3122_v23  ;;  %v3040_v3 = vpop.f32.mrf.mxu1 }
 0x821   :  { %v3120_v34 = vsel %vm3088_vm5, %v3038_v26, %v3104_v25  ;;  %vm3091_vm6 = vcmp.ge.f32.partialorder %v3049_v27, 0.0  ;;  %v3107_v12 = vmul.f32 0.01, %v3049_v27  ;;  %v3041_v53 = vadd.f32 %v5006_v41, %v3040_v3 }
 0x822   :  { %3136 = vst [vmem:[%s5082_s10 + $0x20] sm:$0xff] %v3120_v34  ;;  %v4138_v35 = vpop.f32.mrf.mxu1 }
 0x823   :  { %v3123_v36 = vsel %vm3091_vm6, %v3049_v27, %v3107_v12  ;;  %vm3089_vm7 = vcmp.ge.f32.partialorder %v3041_v53, 0.0  ;;  %v3105_v37 = vmul.f32 0.01, %v3041_v53  ;;  %v3062_v39 = vadd.f32 %v4138_v35, %v5006_v41 }
 0x824   :  { %3139 = vst [vmem:[%s5082_s10 + $0x38] sm:$0xff] %v3123_v36  ;;  %v3053_v7 = vpop.f32.mrf.mxu1 }
 0x825   :  { %v3121_v58 = vsel %vm3089_vm7, %v3041_v53, %v3105_v37  ;;  %vm3094_vm8 = vcmp.ge.f32.partialorder %v3062_v39, 0.0  ;;  %v3110_v32 = vmul.f32 0.01, %v3062_v39  ;;  %v3054_v51 = vadd.f32 %v5006_v41, %v3053_v7 }
 0x826   :  { %3137 = vst [vmem:[%s5082_s10 + $0x28] sm:$0xff] %v3121_v58  ;;  %v4139_v44 = vpop.f32.mrf.mxu1 }
 0x827   :  { %v3126_v46 = vsel %vm3094_vm8, %v3062_v39, %v3110_v32  ;;  %vm3092_vm9 = vcmp.ge.f32.partialorder %v3054_v51, 0.0  ;;  %v3108_v61 = vmul.f32 0.01, %v3054_v51  ;;  %v3065_v43 = vadd.f32 %v4139_v44, %v5006_v41 }
 0x828   :  { %3142 = vst [vmem:[%s5082_s10 + $0x50] sm:$0xff] %v3126_v46  ;;  %v3056_v4 = vpop.f32.mrf.mxu1 }
 0x829   :  { %v3124_v21 = vsel %vm3092_vm9, %v3054_v51, %v3108_v61  ;;  %vm3095_vm10 = vcmp.ge.f32.partialorder %v3065_v43, 0.0  ;;  %v3111_v62 = vmul.f32 0.01, %v3065_v43  ;;  %v3057_v13 = vadd.f32 %v5006_v41, %v3056_v4 }
 0x82a   :  { %3140 = vst [vmem:[%s5082_s10 + $0x40] sm:$0xff] %v3124_v21  ;;  %v4142_v0 = vpop.f32.mrf.mxu1 }
 0x82b   :  { %v3127_v48 = vsel %vm3095_vm10, %v3065_v43, %v3111_v62  ;;  %vm3093_vm11 = vcmp.ge.f32.partialorder %v3057_v13, 0.0  ;;  %v3109_v50 = vmul.f32 0.01, %v3057_v13  ;;  %v3078_v20 = vadd.f32 %v4142_v0, %v5006_v41 }
 0x82c   :  { %3143 = vst [vmem:[%s5082_s10 + $0x58] sm:$0xff] %v3127_v48  ;;  %v3069_v9 = vpop.f32.mrf.mxu1 }
 0x82d   :  { %v3125_v49 = vsel %vm3093_vm11, %v3057_v13, %v3109_v50  ;;  %vm3098_vm12 = vcmp.ge.f32.partialorder %v3078_v20, 0.0  ;;  %v3114_v8 = vmul.f32 0.01, %v3078_v20  ;;  %v3070_v24 = vadd.f32 %v5006_v41, %v3069_v9 }
 0x82e   :  { %3141 = vst [vmem:[%s5082_s10 + $0x48] sm:$0xff] %v3125_v49  ;;  %v4143_v38 = vpop.f32.mrf.mxu1 }
 0x82f   :  { %v3130_v52 = vsel %vm3098_vm12, %v3078_v20, %v3114_v8  ;;  %vm3096_vm13 = vcmp.ge.f32.partialorder %v3070_v24, 0.0  ;;  %v3112_v19 = vmul.f32 0.01, %v3070_v24  ;;  %v3081_v60 = vadd.f32 %v4143_v38, %v5006_v41 }
 0x830   :  { %3146 = vst [vmem:[%s5082_s10 + $0x70] sm:$0xff] %v3130_v52  ;;  %v3072_v57 = vpop.f32.mrf.mxu1 }
 0x831   :  { %v3128_v40 = vsel %vm3096_vm13, %v3070_v24, %v3112_v19  ;;  %vm3099_vm14 = vcmp.ge.f32.partialorder %v3081_v60, 0.0  ;;  %v3115_v14 = vmul.f32 0.01, %v3081_v60  ;;  %v3073_v16 = vadd.f32 %v5006_v41, %v3072_v57 }
 0x832   :  { %3144 = vst [vmem:[%s5082_s10 + $0x60] sm:$0xff] %v3128_v40 }
 0x833   :  { %v3131_v11 = vsel %vm3099_vm14, %v3081_v60, %v3115_v14  ;;  %vm3097_vm15 = vcmp.ge.f32.partialorder %v3073_v16, 0.0  ;;  %v3113_v2 = vmul.f32 0.01, %v3073_v16 }
 0x834   :  { %3147 = vst [vmem:[%s5082_s10 + $0x78] sm:$0xff] %v3131_v11 }
 0x835   :  { %v3129_v54 = vsel %vm3097_vm15, %v3073_v16, %v3113_v2 }
 0x836   :  { %3145 = vst [vmem:[%s5082_s10 + $0x68] sm:$0xff] %v3129_v54 }
 0x837   :  { %3152 = vsyncpa [#allocation3], 1 }
 0x838   :  { %3153 = vsyncpa [#allocation5], 1 }
 0x839   :  { %3154 = vsyncpa [#allocation8], 1 }
 0x83a   :  { %3155 = vsyncpa [#allocation11], 1 }

</bundles_post_ra>
